<compile_context>
chip_gen: v7x
topology: tpu7x:2x2x1
jax: 0.10.0
libtpu: 0.0.40
codegen_flags: <defaults>
</compile_context>

<pallas_src>
import functools

import jax
import jax.numpy as jnp
from jax import lax
from jax.experimental import pallas as pl
from jax.experimental.pallas import tpu as pltpu


def _rc_kernel(x_ref, w_ref, b_ref, o_ref, *, ksize, pad, activated,
               compute_dtype):
    # x_ref: (BB, Cin, H, W)       NCHW input tile (unpadded)
    # w_ref: (Cout, K*K*Cin_p)     taps-outer / channels-inner, pre-cast
    # b_ref: (Cout, 1)             f32 bias
    # o_ref: (BB, Cout, Ho*Wo)     NCHW output, spatial flattened on lanes
    BB, Cin, H, W = x_ref.shape
    Cout = o_ref.shape[1]
    Cin_p = w_ref.shape[1] // (ksize * ksize)
    Hp, Wp = H + 2 * pad, W + 2 * pad
    Ho, Wo = Hp - ksize + 1, Wp - ksize + 1
    L = Hp * Wp                                  # per-image flat block (lanes)
    s_max = (ksize - 1) * Wp + (ksize - 1)       # largest tap lane shift

    x = x_ref[...]
    if compute_dtype is not None:
        # Early cast: all following relayout work runs on packed vregs.
        x = x.astype(compute_dtype)

    # --- reflection padding for the whole batch block at once (VMEM only) ---
    if pad > 0:
        left = [x[:, :, :, i:i + 1] for i in range(pad, 0, -1)]
        right = [x[:, :, :, W - 2 - i:W - 1 - i] for i in range(pad)]
        xw = jnp.concatenate(left + [x] + right, axis=3)     # (BB,Cin,H,Wp)
        top = [xw[:, :, i:i + 1, :] for i in range(pad, 0, -1)]
        bot = [xw[:, :, H - 2 - i:H - 1 - i, :] for i in range(pad)]
        xp = jnp.concatenate(top + [xw] + bot, axis=2)       # (BB,Cin,Hp,Wp)
    else:
        xp = x

    # --- channel pad to a full packed sublane group (8 f32 / 16 bf16 rows).
    # The matching weight columns are zero, so values are irrelevant; zeros
    # keep it exact.  This makes the tap concat below whole-vreg aligned. ---
    if Cin_p > Cin:
        xp = jnp.concatenate(
            [xp, jnp.zeros((BB, Cin_p - Cin, Hp, Wp), xp.dtype)], axis=1)

    # --- ONE lane compaction per image: (Cin_p, Hp, Wp) -> (Cin_p, L), then
    # lay the images side by side on the lane axis plus a small zero tail so
    # the largest tap shift stays in bounds.  (Static unroll: batch_block is
    # expected to stay small; per-image body here is a single reshape.) ---
    parts = [xp[b].reshape(Cin_p, L) for b in range(BB)]
    if s_max > 0:
        parts.append(jnp.zeros((Cin_p, s_max), xp.dtype))
    flat = jnp.concatenate(parts, axis=1)        # (Cin_p, BB*L + s_max)

    # --- im2col: K*K cheap static lane shifts of the dense buffer.  Garbage
    # read across image boundaries / the tail only feeds output lanes that
    # are discarded by the final compaction. ---
    n_lanes = BB * L
    taps = []
    for kh in range(ksize):
        for kw in range(ksize):
            s = kh * Wp + kw
            taps.append(flat[:, s:s + n_lanes])
    patches = jnp.concatenate(taps, axis=0)      # (K*K*Cin_p, BB*L), aligned

    # --- single batched MXU matmul + single f32 epilogue ---
    acc = jnp.dot(w_ref[...], patches, preferred_element_type=jnp.float32)
    acc = acc + b_ref[...]                       # (Cout, BB*L), one broadcast
    if activated:
        acc = jnp.maximum(acc, 0.0)
    acc = acc.astype(o_ref.dtype)

    # --- output compaction (once per image) + lane-dense NCHW stores ---
    for b in range(BB):
        blk = acc[:, b * L:(b + 1) * L].reshape(Cout, Hp, Wp)
        o_ref[b] = blk[:, :Ho, :Wo].reshape(Cout, Ho * Wo)


def rc_forward(x_nchw, weight_oihw, bias, *, pad_size=1, activated=True,
               batch_block=None, mxu_dtype=None):
    """ReflectionPad2d(pad) -> Conv2d(K, stride 1) -> optional ReLU.

    x_nchw:      (B, Cin, H, W)
    weight_oihw: (Cout, Cin, K, K)   PyTorch Conv2d layout
    bias:        (Cout,)
    mxu_dtype:   None (f32; recommended on v5e) or jnp.bfloat16 (v6e/v7x).
    returns      (B, Cout, H + 2*pad - K + 1, W + 2*pad - K + 1)
    """
    B, Cin, H, W = x_nchw.shape
    Cout, Cin_w, KH, KW = weight_oihw.shape
    assert Cin_w == Cin and KH == KW
    K = KH
    assert 0 <= pad_size < min(H, W), "reflection pad must be < spatial dims"
    Ho = H + 2 * pad_size - K + 1
    Wo = W + 2 * pad_size - K + 1
    assert Ho >= 1 and Wo >= 1

    if batch_block is None:
        batch_block = B                # collapse the grid for small batches
    assert B % batch_block == 0
    grid = (B // batch_block,)

    compute_dtype = mxu_dtype if mxu_dtype is not None else x_nchw.dtype
    packing = max(1, 4 // jnp.dtype(compute_dtype).itemsize)
    Cin_p = ((Cin + 8 * packing - 1) // (8 * packing)) * (8 * packing)

    # One-time (tiny) parameter prep in the wrapper: reorder to taps-outer /
    # channels-inner, zero-pad the channel columns, pre-cast to the MXU dtype
    # (removes the per-grid-step cast inside the kernel).
    w_perm = jnp.transpose(weight_oihw, (0, 2, 3, 1))          # (Cout,K,K,Cin)
    w_perm = jnp.pad(w_perm, ((0, 0), (0, 0), (0, 0), (0, Cin_p - Cin)))
    w_mat = w_perm.reshape(Cout, K * K * Cin_p).astype(compute_dtype)
    b_col = bias.reshape(Cout, 1).astype(jnp.float32)

    kernel = functools.partial(
        _rc_kernel, ksize=K, pad=pad_size, activated=activated,
        compute_dtype=mxu_dtype)

    out_bytes = B * Cout * Ho * Wo * jnp.dtype(x_nchw.dtype).itemsize
    cost = pl.CostEstimate(
        flops=2 * B * Cout * K * K * Cin * Ho * Wo,
        transcendentals=0,
        bytes_accessed=(x_nchw.size * x_nchw.dtype.itemsize
                        + w_mat.size * w_mat.dtype.itemsize
                        + b_col.size * b_col.dtype.itemsize
                        + out_bytes),
    )

    out_flat = pl.pallas_call(
        kernel,
        out_shape=jax.ShapeDtypeStruct((B, Cout, Ho * Wo), x_nchw.dtype),
        grid_spec=pltpu.PrefetchScalarGridSpec(
            num_scalar_prefetch=0,
            grid=grid,
            in_specs=[
                pl.BlockSpec((batch_block, Cin, H, W), lambda g: (g, 0, 0, 0)),
                pl.BlockSpec((Cout, K * K * Cin_p), lambda g: (0, 0)),
                pl.BlockSpec((Cout, 1), lambda g: (0, 0)),
            ],
            out_specs=pl.BlockSpec(
                (batch_block, Cout, Ho * Wo), lambda g: (g, 0, 0)),
        ),
        compiler_params=pltpu.CompilerParams(
            dimension_semantics=("parallel",),
        ),
        cost_estimate=cost,
    )(x_nchw, w_mat, b_col)

    # Contiguous row-major reshape: free (no data movement), already NCHW.
    return out_flat.reshape(B, Cout, Ho, Wo)


def _reference(x_nchw, weight_oihw, bias, *, pad_size=1, activated=True):
    """Pure-JAX reference (lax.conv) for correctness check."""
    x_pad = jnp.pad(
        x_nchw,
        ((0, 0), (0, 0), (pad_size, pad_size), (pad_size, pad_size)),
        mode="reflect",
    )
    y = lax.conv_general_dilated(
        x_pad, weight_oihw, window_strides=(1, 1), padding="VALID",
        dimension_numbers=("NCHW", "OIHW", "NCHW"),
    ) + bias.reshape(1, -1, 1, 1)
    if activated:
        y = jnp.maximum(y, 0.0)
    return y


if __name__ == "__main__":
    # Small shapes consistent with the module: batch=2, Cin=4, Cout=8, 16x16.
    B, Cin, Cout, H, W, K = 2, 4, 8, 16, 16, 3

    key = jax.random.PRNGKey(0)
    kx, kw, kb = jax.random.split(key, 3)

    x = jax.random.normal(kx, (B, Cin, H, W), dtype=jnp.float32)
    fan_in = Cin * K * K
    bound = 1.0 / (fan_in ** 0.5)
    weight = jax.random.uniform(
        kw, (Cout, Cin, K, K), minval=-bound, maxval=bound, dtype=jnp.float32)
    bias = jax.random.uniform(
        kb, (Cout,), minval=-bound, maxval=bound, dtype=jnp.float32)

    ref = _reference(x, weight, bias, pad_size=1, activated=True)

    # f32 path (v5e recommendation), single grid step.
    out = rc_forward(x, weight, bias, pad_size=1, activated=True)
    out = jax.block_until_ready(out)
    assert out.shape == (B, Cout, H, W)
    assert jnp.allclose(out, ref, atol=1e-5, rtol=1e-5)

    # bf16 MXU path (v6e/v7x recommendation): early bf16 cast, f32 accumulate.
    out_bf16 = rc_forward(x, weight, bias, pad_size=1, activated=True,
                          mxu_dtype=jnp.bfloat16)
    out_bf16 = jax.block_until_ready(out_bf16)
    assert jnp.allclose(out_bf16, ref, atol=5e-2, rtol=5e-2)

    # activated=False path.
    ref_na = _reference(x, weight, bias, pad_size=1, activated=False)
    out_na = rc_forward(x, weight, bias, pad_size=1, activated=False)
    out_na = jax.block_until_ready(out_na)
    assert jnp.allclose(out_na, ref_na, atol=1e-5, rtol=1e-5)

    print("KERNEL_OK")
</pallas_src>

<mosaic_0001>
module attributes {stable_mosaic.version = 11 : i64} {
  func.func @_rc_kernel(%arg0: i32, %arg1: memref<2x4x16x16xf32, #tpu.memory_space<vmem>>, %arg2: memref<8x72xf32, #tpu.memory_space<vmem>>, %arg3: memref<8x1xf32, #tpu.memory_space<vmem>>, %arg4: memref<2x8x256xf32, #tpu.memory_space<vmem>>) attributes {dimension_semantics = [#tpu.dimension_semantics<parallel>], iteration_bounds = array<i64: 1>, scalar_prefetch = 0 : i64, scratch_operands = 0 : i64, tpu.core_type = #tpu.core_type<tc>, window_params = [{transform_indices = @transform_0, window_bounds = array<i64: 2, 4, 16, 16>}, {pipeline_mode = #tpu.pipeline_mode<synchronous>, transform_indices = @transform_1, window_bounds = array<i64: 8, 72>}, {pipeline_mode = #tpu.pipeline_mode<synchronous>, transform_indices = @transform_2, window_bounds = array<i64: 8, 1>}, {transform_indices = @transform_3, window_bounds = array<i64: 2, 8, 256>}]} {
    %c0 = arith.constant 0 : index
    %c0_0 = arith.constant 0 : index
    %c0_1 = arith.constant 0 : index
    %c0_2 = arith.constant 0 : index
    %0 = vector.load %arg1[%c0, %c0_0, %c0_1, %c0_2] : memref<2x4x16x16xf32, #tpu.memory_space<vmem>>, vector<2x4x16x16xf32>
    %1 = vector.extract_strided_slice %0 {offsets = [0, 0, 0, 1], sizes = [2, 4, 16, 1], strides = [1, 1, 1, 1]} : vector<2x4x16x16xf32> to vector<2x4x16x1xf32>
    %2 = vector.extract_strided_slice %0 {offsets = [0, 0, 0, 14], sizes = [2, 4, 16, 1], strides = [1, 1, 1, 1]} : vector<2x4x16x16xf32> to vector<2x4x16x1xf32>
    %3 = tpu.concatenate %1, %0, %2 in 3 : vector<2x4x16x1xf32>, vector<2x4x16x16xf32>, vector<2x4x16x1xf32> -> vector<2x4x16x18xf32>
    %4 = vector.extract_strided_slice %3 {offsets = [0, 0, 1, 0], sizes = [2, 4, 1, 18], strides = [1, 1, 1, 1]} : vector<2x4x16x18xf32> to vector<2x4x1x18xf32>
    %5 = vector.extract_strided_slice %3 {offsets = [0, 0, 14, 0], sizes = [2, 4, 1, 18], strides = [1, 1, 1, 1]} : vector<2x4x16x18xf32> to vector<2x4x1x18xf32>
    %6 = tpu.concatenate %4, %3, %5 in 2 : vector<2x4x1x18xf32>, vector<2x4x16x18xf32>, vector<2x4x1x18xf32> -> vector<2x4x18x18xf32>
    %cst = arith.constant 0.000000e+00 : f32
    %7 = vector.broadcast %cst : f32 to vector<2x4x18x18xf32>
    %8 = tpu.concatenate %6, %7 in 1 : vector<2x4x18x18xf32>, vector<2x4x18x18xf32> -> vector<2x8x18x18xf32>
    %9 = vector.extract_strided_slice %8 {offsets = [0, 0, 0, 0], sizes = [1, 8, 18, 18], strides = [1, 1, 1, 1]} : vector<2x8x18x18xf32> to vector<1x8x18x18xf32>
    %10 = vector.shape_cast %9 : vector<1x8x18x18xf32> to vector<8x18x18xf32>
    %11 = vector.shape_cast %10 : vector<8x18x18xf32> to vector<8x324xf32>
    %12 = vector.extract_strided_slice %8 {offsets = [1, 0, 0, 0], sizes = [1, 8, 18, 18], strides = [1, 1, 1, 1]} : vector<2x8x18x18xf32> to vector<1x8x18x18xf32>
    %13 = vector.shape_cast %12 : vector<1x8x18x18xf32> to vector<8x18x18xf32>
    %14 = vector.shape_cast %13 : vector<8x18x18xf32> to vector<8x324xf32>
    %cst_3 = arith.constant 0.000000e+00 : f32
    %15 = vector.broadcast %cst_3 : f32 to vector<8x38xf32>
    %16 = tpu.concatenate %11, %14, %15 in 1 : vector<8x324xf32>, vector<8x324xf32>, vector<8x38xf32> -> vector<8x686xf32>
    %17 = vector.extract_strided_slice %16 {offsets = [0, 0], sizes = [8, 648], strides = [1, 1]} : vector<8x686xf32> to vector<8x648xf32>
    %18 = vector.extract_strided_slice %16 {offsets = [0, 1], sizes = [8, 648], strides = [1, 1]} : vector<8x686xf32> to vector<8x648xf32>
    %19 = vector.extract_strided_slice %16 {offsets = [0, 2], sizes = [8, 648], strides = [1, 1]} : vector<8x686xf32> to vector<8x648xf32>
    %20 = vector.extract_strided_slice %16 {offsets = [0, 18], sizes = [8, 648], strides = [1, 1]} : vector<8x686xf32> to vector<8x648xf32>
    %21 = vector.extract_strided_slice %16 {offsets = [0, 19], sizes = [8, 648], strides = [1, 1]} : vector<8x686xf32> to vector<8x648xf32>
    %22 = vector.extract_strided_slice %16 {offsets = [0, 20], sizes = [8, 648], strides = [1, 1]} : vector<8x686xf32> to vector<8x648xf32>
    %23 = vector.extract_strided_slice %16 {offsets = [0, 36], sizes = [8, 648], strides = [1, 1]} : vector<8x686xf32> to vector<8x648xf32>
    %24 = vector.extract_strided_slice %16 {offsets = [0, 37], sizes = [8, 648], strides = [1, 1]} : vector<8x686xf32> to vector<8x648xf32>
    %25 = vector.extract_strided_slice %16 {offsets = [0, 38], sizes = [8, 648], strides = [1, 1]} : vector<8x686xf32> to vector<8x648xf32>
    %26 = tpu.concatenate %17, %18, %19, %20, %21, %22, %23, %24, %25 in 0 : vector<8x648xf32>, vector<8x648xf32>, vector<8x648xf32>, vector<8x648xf32>, vector<8x648xf32>, vector<8x648xf32>, vector<8x648xf32>, vector<8x648xf32>, vector<8x648xf32> -> vector<72x648xf32>
    %c0_4 = arith.constant 0 : index
    %c0_5 = arith.constant 0 : index
    %27 = vector.load %arg2[%c0_4, %c0_5] : memref<8x72xf32, #tpu.memory_space<vmem>>, vector<8x72xf32>
    %cst_6 = arith.constant dense<0.000000e+00> : vector<8x648xf32>
    %28 = tpu.matmul %27, %26, %cst_6 {dimension_numbers = #tpu.dot_dimension_numbers<[1], [0], [0], [1], [0, 0, 1, 1], [], []>} : vector<8x72xf32>, vector<72x648xf32>, vector<8x648xf32> -> vector<8x648xf32>
    %c0_7 = arith.constant 0 : index
    %c0_8 = arith.constant 0 : index
    %29 = vector.load %arg3[%c0_7, %c0_8] : memref<8x1xf32, #tpu.memory_space<vmem>>, vector<8x1xf32>
    %30 = vector.broadcast %29 : vector<8x1xf32> to vector<8x648xf32>
    %31 = arith.addf %28, %30 : vector<8x648xf32>
    %cst_9 = arith.constant 0.000000e+00 : f32
    %32 = vector.broadcast %cst_9 : f32 to vector<8x648xf32>
    %33 = arith.maximumf %31, %32 : vector<8x648xf32>
    %34 = vector.extract_strided_slice %33 {offsets = [0, 0], sizes = [8, 324], strides = [1, 1]} : vector<8x648xf32> to vector<8x324xf32>
    %35 = vector.shape_cast %34 : vector<8x324xf32> to vector<8x18x18xf32>
    %36 = vector.extract_strided_slice %35 {offsets = [0, 0, 0], sizes = [8, 16, 16], strides = [1, 1, 1]} : vector<8x18x18xf32> to vector<8x16x16xf32>
    %37 = vector.shape_cast %36 : vector<8x16x16xf32> to vector<8x256xf32>
    %c0_10 = arith.constant 0 : index
    %c0_11 = arith.constant 0 : index
    %c0_12 = arith.constant 0 : index
    %38 = vector.load %arg4[%c0_10, %c0_11, %c0_12] : memref<2x8x256xf32, #tpu.memory_space<vmem>>, vector<1x8x256xf32>
    %39 = vector.shape_cast %38 : vector<1x8x256xf32> to vector<8x256xf32>
    %40 = vector.shape_cast %37 : vector<8x256xf32> to vector<1x8x256xf32>
    tpu.vector_store %arg4[%c0_10, %c0_11, %c0_12], %40 {strides = array<i32>} : memref<2x8x256xf32, #tpu.memory_space<vmem>>, vector<1x8x256xf32>,
    %41 = vector.extract_strided_slice %33 {offsets = [0, 324], sizes = [8, 324], strides = [1, 1]} : vector<8x648xf32> to vector<8x324xf32>
    %42 = vector.shape_cast %41 : vector<8x324xf32> to vector<8x18x18xf32>
    %43 = vector.extract_strided_slice %42 {offsets = [0, 0, 0], sizes = [8, 16, 16], strides = [1, 1, 1]} : vector<8x18x18xf32> to vector<8x16x16xf32>
    %44 = vector.shape_cast %43 : vector<8x16x16xf32> to vector<8x256xf32>
    %c1 = arith.constant 1 : index
    %c0_13 = arith.constant 0 : index
    %c0_14 = arith.constant 0 : index
    %45 = vector.load %arg4[%c1, %c0_13, %c0_14] : memref<2x8x256xf32, #tpu.memory_space<vmem>>, vector<1x8x256xf32>
    %46 = vector.shape_cast %45 : vector<1x8x256xf32> to vector<8x256xf32>
    %47 = vector.shape_cast %44 : vector<8x256xf32> to vector<1x8x256xf32>
    tpu.vector_store %arg4[%c1, %c0_13, %c0_14], %47 {strides = array<i32>} : memref<2x8x256xf32, #tpu.memory_space<vmem>>, vector<1x8x256xf32>,
    return
  }
  func.func @transform_0(%arg0: i32) -> (i32, i32, i32, i32) {
    %c0_i32 = arith.constant 0 : i32
    %c0_i32_0 = arith.constant 0 : i32
    %c0_i32_1 = arith.constant 0 : i32
    %c0_i32_2 = arith.constant 0 : i32
    return %arg0, %c0_i32, %c0_i32_0, %c0_i32_1 : i32, i32, i32, i32
  }
  func.func @transform_1(%arg0: i32) -> (i32, i32) {
    %c0_i32 = arith.constant 0 : i32
    %c0_i32_0 = arith.constant 0 : i32
    %c0_i32_1 = arith.constant 0 : i32
    return %c0_i32, %c0_i32_0 : i32, i32
  }
  func.func @transform_2(%arg0: i32) -> (i32, i32) {
    %c0_i32 = arith.constant 0 : i32
    %c0_i32_0 = arith.constant 0 : i32
    %c0_i32_1 = arith.constant 0 : i32
    return %c0_i32, %c0_i32_0 : i32, i32
  }
  func.func @transform_3(%arg0: i32) -> (i32, i32, i32) {
    %c0_i32 = arith.constant 0 : i32
    %c0_i32_0 = arith.constant 0 : i32
    %c0_i32_1 = arith.constant 0 : i32
    return %arg0, %c0_i32, %c0_i32_0 : i32, i32, i32
  }
}

</mosaic_0001>

<bundles_post_ra>
// kernel: tpu_custom_call.1
= control target key start
LH: loop header
LB: loop body
LE: loop exit
PB: predicated region body
PF: predicated region fallthrough
CT: control target
= control target key end

     0   :  { %8 = vsyncpa [#allocation3], 0  ;;  %s3925_s0 = inlined_call_operand.hbm [shape: f32[2,4,16,16], index: 0, kind: input, shape index: {}]   ;;  %s3926_s1 = inlined_call_operand.vmem [shape: f32[8,72], index: 1, kind: input, shape index: {}]   ;;  %s3927_s2 = inlined_call_operand.vmem [shape: f32[8,1], index: 2, kind: input, shape index: {}]   ;;  %s3928_s3 = inlined_call_operand.hbm [shape: f32[2,8,256], index: 3, kind: output, shape index: {}]  }
   0x1   :  { %9 = vsyncpa [#allocation4], 0  ;;  %s2999_s12 = smov [#allocation2]   ;;  %s2951_s16 = scalar_lea.hbm %s3925_s0, 2048 }
   0x2   :  { %s15_s13 = sshll.u32 %s2999_s12, 4  ;;  %p2952_p0 = scmp.ne.s32.totalorder %s3925_s0, %s2951_s16  ;;  %s16_s13 = int_to_ptr.vmem [resolvable:$true] %s15_s13 }
   0x3   :  { %p2955_p1 = scmp.lt.u32.totalorder %s2951_s16, %s3925_s0 }
   0x5   :  { %p2957_p2 = pnand %p2955_p1, %p2952_p0 }
   0x7   :  { %2960 = shalt.err (!%p2957_p2)
}
   0x8   :  { %s2961_s21 = scalar_lea.vmem %s16_s13, 2048  ;;  %p2966_p4 = scmp.lt.s32.totalorder %s16_s13, %s16_s13 }
   0x9   :  { %p2962_p3 = scmp.ne.s32.totalorder %s16_s13, %s2961_s21  ;;  %p2967_p5 = scmp.lt.s32.totalorder %s2961_s21, %s2961_s21 }
   0xb   :  { %p2968_p6 = por %p2967_p5, %p2966_p4 }
   0xd   :  { %p2969_p7 = pnand %p2968_p6, %p2962_p3 }
   0xf   :  { %2972 = shalt.err (!%p2969_p7)
}
  0x10   :  { %s3000_s22 = smov 128   ;;  %s3001_s23 = smov 8  }
  0x11   :  { %21 = dma.hbm_to_vmem [thread:$0]  %s3925_s0, 2048, %s16_s13, [#allocation3], %s3000_s22, %s3000_s22, %s3001_s23  }
  0x12   :  { %2995 = dma.done.wait [#allocation3], 2048  }
  0x13   :  { %2996 = vsyncadd [#allocation3], 4294965248  ;;  %v41_v0 = vld [vmem:[#allocation2 + $0x60] sm:$0xff]  ;;  %s3002_s26 = smov 127   ;;  %v43_v2 = vld [vmem:[#allocation2 + $0x70] sm:$0xff]  ;;  %s3003_s27 = smov 1   ;;  %v357_v23 = vlaneseq }
  0x14   :  { %v37_v1 = vld [vmem:[#allocation2 + $0x40] sm:$0xff]  ;;  %85 = vrot.lane.b32.xlu1 %v41_v0, %s3002_s26  ;;  %v39_v3 = vld [vmem:[#allocation2 + $0x50] sm:$0xff]  ;;  %v3004_v4 = vmov 0.0   ;;  %s3005_s0 = smov 3   ;;  %v40_v5 = vld [vmem:[#allocation2 + $0x58] sm:$0xff]  ;;  %vm205_vm0 = vcmask 7168  }
  0x15   :  { %77 = vrot.lane.b32.xlu0 %v37_v1, %s3002_s26  ;;  %1169 = vmatprep.mubr.f32.mxu0 %v3004_v4  ;;  %v38_v6 = vld [vmem:[#allocation2 + $0x48] sm:$0xff]  ;;  %v44_v7 = vld [vmem:[#allocation2 + $0x78] sm:$0xff]  ;;  %v29_v10 = vld [vmem:[#allocation2] sm:$0xff]  ;;  %v3006_v21 = vmov 1983009808   ;;  %v358_v27 = vshrl.u32 %v357_v23, 7  ;;  %v384_v33 = vcombine.low %v3004_v4, %v3004_v4 }
  0x16   :  { %1240 = vmatprep.mubr.f32.mxu1 %v3004_v4  ;;  %v42_v8 = vld [vmem:[#allocation2 + $0x68] sm:$0xff]  ;;  %v32_v11 = vld [vmem:[#allocation2 + $0x18] sm:$0xff]  ;;  %v31_v12 = vld [vmem:[#allocation2 + $0x10] sm:$0xff]  ;;  %v355_v22 = vunpack.c.l.s4 %v3006_v21  ;;  %vm222_vm1 = vcmask 138240   ;;  %v3007_v31 = vmov 1934713408  }
  0x17   :  { %v30_v9 = vld [vmem:[#allocation2 + $0x8] sm:$0xff]  ;;  %v33_v14 = vld [vmem:[#allocation2 + $0x20] sm:$0xff]  ;;  %v36_v15 = vld [vmem:[#allocation2 + $0x38] sm:$0xff]  ;;  %v395_v32 = vunpack.c.l.s4 %v3007_v31  ;;  %vm271_vm2 = vcmask 1040384   ;;  %s3008_s28 = smov 36   ;;  %s3009_s29 = smov 18  }
  0x18   :  { %89 = vrot.lane.b32.xlu1 %v43_v2, %s3002_s26  ;;  %v34_v13 = vld [vmem:[#allocation2 + $0x28] sm:$0xff]  ;;  %v35_v16 = vld [vmem:[#allocation2 + $0x30] sm:$0xff]  ;;  %v356_v26 = vunpack.c.0.s8 %v355_v22  ;;  %s3010_s30 = smov 72   ;;  %s3011_s4 = smov 54   ;;  %vm600_vm3 = vcmask 146432   ;;  %vm602_vm4 = vcmask 293888  }
  0x19   :  { %81 = vrot.lane.b32.xlu0 %v39_v3, %s3002_s26  ;;  %v396_v42 = vunpack.c.0.s8 %v395_v32  ;;  %s3012_s5 = smov 108   ;;  %s3013_s6 = smov 90   ;;  %vm604_vm5 = vcmask 441344   ;;  %vm606_vm6 = vcmask 588800   ;;  %vm608_vm7 = vcmask 736256  }
  0x1a   :  { %v3134_v30 = vsub.s32 %v356_v26, %v358_v27  ;;  %s3014_s7 = smov 126   ;;  %s3015_s8 = smov 52   ;;  %vm610_vm8 = vcmask 883712   ;;  %vm3929_vm9 = vcmask 1031168   ;;  %vm614_vm10 = vcmask 130048  }
  0x1b   :  { %v3163_v56 = vsub.s32 %v396_v42, %v358_v27  ;;  %s3016_s9 = smov 124   ;;  %s3017_s10 = smov 88   ;;  %vm616_vm11 = vcmask 277504   ;;  %vm618_vm12 = vcmask 424960   ;;  %vm620_vm13 = vcmask 572416  }
  0x1c   :  { %129 = vrot.lane.b32.xlu1 %v39_v3, %s3003_s27  ;;  %v391_v43 = vrot.slane %v384_v33, %v3134_v30  ;;  %s3018_s11 = smov 34   ;;  %s3019_s12 = smov 16   ;;  %vm622_vm14 = vcmask 719872   ;;  %vm624_vm15 = vcmask 867328  }
  0x1d   :  { %125 = vrot.lane.b32.xlu0 %v37_v1, %s3003_s27  ;;  %s3020_s13 = smov 70   ;;  %s3021_s14 = smov 14  }
  0x1e   :  { %v424_v57 = vcombine.low %v391_v43, %v391_v43  ;;  %s3022_s15 = smov 106   ;;  %s3023_s16 = smov 32  }
  0x1f   :  { %s3024_s17 = smov 50   ;;  %s3025_s18 = smov 68  }
  0x20   :  { %137 = vrot.lane.b32.xlu1 %v43_v2, %s3003_s27  ;;  %s3026_s19 = smov 92   ;;  %s3027_s20 = smov 91  }
  0x21   :  { %133 = vrot.lane.b32.xlu0 %v41_v0, %s3003_s27  ;;  %s3028_s21 = smov 109   ;;  %s3029_s22 = smov 110  }
  0x24   :  { %177 = vrot.lane.b32.xlu1 %v39_v3, %s3005_s0 }
  0x25   :  { %173 = vrot.lane.b32.xlu0 %v37_v1, %s3005_s0 }
  0x28   :  { %185 = vrot.lane.b32.xlu1 %v43_v2, %s3005_s0 }
  0x29   :  { %181 = vrot.lane.b32.xlu0 %v41_v0, %s3005_s0 }
  0x2c   :  { %83 = vrot.lane.b32.xlu1 %v40_v5, %s3002_s26 }
  0x2d   :  { %79 = vrot.lane.b32.xlu0 %v38_v6, %s3002_s26 }
  0x30   :  { %91 = vrot.lane.b32.xlu1 %v44_v7, %s3002_s26 }
  0x31   :  { %87 = vrot.lane.b32.xlu0 %v42_v8, %s3002_s26 }
  0x34   :  { %131 = vrot.lane.b32.xlu1 %v40_v5, %s3003_s27 }
  0x35   :  { %127 = vrot.lane.b32.xlu0 %v38_v6, %s3003_s27 }
  0x38   :  { %139 = vrot.lane.b32.xlu1 %v44_v7, %s3003_s27 }
  0x39   :  { %135 = vrot.lane.b32.xlu0 %v42_v8, %s3003_s27 }
  0x3c   :  { %179 = vrot.lane.b32.xlu1 %v40_v5, %s3005_s0 }
  0x3d   :  { %175 = vrot.lane.b32.xlu0 %v38_v6, %s3005_s0 }
  0x40   :  { %187 = vrot.lane.b32.xlu1 %v44_v7, %s3005_s0 }
  0x41   :  { %183 = vrot.lane.b32.xlu0 %v42_v8, %s3005_s0 }
  0x44   :  { %63 = vrot.lane.b32.xlu1 %v30_v9, %s3002_s26 }
  0x45   :  { %61 = vrot.lane.b32.xlu0 %v29_v10, %s3002_s26 }
  0x48   :  { %67 = vrot.lane.b32.xlu1 %v32_v11, %s3002_s26 }
  0x49   :  { %65 = vrot.lane.b32.xlu0 %v31_v12, %s3002_s26 }
  0x4c   :  { %71 = vrot.lane.b32.xlu1 %v34_v13, %s3002_s26 }
  0x4d   :  { %69 = vrot.lane.b32.xlu0 %v33_v14, %s3002_s26 }
  0x50   :  { %75 = vrot.lane.b32.xlu1 %v36_v15, %s3002_s26 }
  0x51   :  { %73 = vrot.lane.b32.xlu0 %v35_v16, %s3002_s26 }
  0x54   :  { %111 = vrot.lane.b32.xlu1 %v30_v9, %s3003_s27 }
  0x55   :  { %109 = vrot.lane.b32.xlu0 %v29_v10, %s3003_s27 }
  0x58   :  { %115 = vrot.lane.b32.xlu1 %v32_v11, %s3003_s27 }
  0x59   :  { %113 = vrot.lane.b32.xlu0 %v31_v12, %s3003_s27 }
  0x5c   :  { %119 = vrot.lane.b32.xlu1 %v34_v13, %s3003_s27 }
  0x5d   :  { %117 = vrot.lane.b32.xlu0 %v33_v14, %s3003_s27 }
  0x60   :  { %123 = vrot.lane.b32.xlu1 %v36_v15, %s3003_s27 }
  0x61   :  { %121 = vrot.lane.b32.xlu0 %v35_v16, %s3003_s27  ;;  %s3034_s27 = smov 112  }
  0x64   :  { %159 = vrot.lane.b32.xlu1 %v30_v9, %s3005_s0 }
  0x65   :  { %157 = vrot.lane.b32.xlu0 %v29_v10, %s3005_s0 }
  0x68   :  { %163 = vrot.lane.b32.xlu1 %v32_v11, %s3005_s0 }
  0x69   :  { %161 = vrot.lane.b32.xlu0 %v31_v12, %s3005_s0  ;;  %v3182_v12 = vrot.slane %v424_v57, %v3163_v56 }
  0x6c   :  { %167 = vrot.lane.b32.xlu1 %v34_v13, %s3005_s0 }
  0x6d   :  { %165 = vrot.lane.b32.xlu0 %v33_v14, %s3005_s0 }
  0x70   :  { %171 = vrot.lane.b32.xlu1 %v36_v15, %s3005_s0 }
  0x71   :  { %169 = vrot.lane.b32.xlu0 %v35_v16, %s3005_s0  ;;  %s3035_s0 = smov 94  }
  0x86   :  { %v86_v17 = vpop.permute.xlu1 %85 }
  0x87   :  { %v78_v18 = vpop.permute.xlu0 %77 }
  0x8a   :  { %v90_v19 = vpop.permute.xlu1 %89 }
  0x8b   :  { %v82_v20 = vpop.permute.xlu0 %81 }
  0x8e   :  { %v130_v24 = vpop.permute.xlu1 %129 }
  0x8f   :  { %v126_v25 = vpop.permute.xlu0 %125  ;;  %v216_v34 = vsel %vm205_vm0, %v82_v20, %v130_v24 }
  0x90   :  { %v214_v35 = vsel %vm205_vm0, %v78_v18, %v126_v25 }
  0x92   :  { %v138_v28 = vpop.permute.xlu1 %137 }
  0x93   :  { %v134_v29 = vpop.permute.xlu0 %133  ;;  %v220_v40 = vsel %vm205_vm0, %v90_v19, %v138_v28 }
  0x94   :  { %v218_v41 = vsel %vm205_vm0, %v86_v17, %v134_v29 }
  0x96   :  { %v178_v36 = vpop.permute.xlu1 %177 }
  0x97   :  { %v174_v37 = vpop.permute.xlu0 %173  ;;  %v3141_v38 = vsel %vm222_vm1, %v216_v34, %v178_v36 }
  0x98   :  { %v3144_v39 = vsel %vm222_vm1, %v214_v35, %v174_v37  ;;  %v252_v44 = vrot.slane %v3141_v38, 1  ;;  %v287_v45 = vrot.slane %v3141_v38, 7 }
  0x99   :  { %v251_v46 = vrot.slane %v3144_v39, 1  ;;  %v284_v47 = vrot.slane %v3144_v39, 7 }
  0x9a   :  { %v186_v48 = vpop.permute.xlu1 %185  ;;  %v341_v58 = vsel %vm271_vm2, %v252_v44, %v287_v45 }
  0x9b   :  { %v182_v49 = vpop.permute.xlu0 %181  ;;  %v3154_v50 = vsel %vm222_vm1, %v220_v40, %v186_v48  ;;  %v340_v59 = vsel %vm271_vm2, %v251_v46, %v284_v47 }
  0x9c   :  { %v3157_v51 = vsel %vm222_vm1, %v218_v41, %v182_v49  ;;  %v254_v52 = vrot.slane %v3154_v50, 1  ;;  %v293_v53 = vrot.slane %v3154_v50, 7 }
  0x9d   :  { %v253_v54 = vrot.slane %v3157_v51, 1  ;;  %v290_v55 = vrot.slane %v3157_v51, 7 }
  0x9e   :  { %v343_v60 = vsel %vm271_vm2, %v254_v52, %v293_v53  ;;  %v84_v62 = vpop.permute.xlu1 %83 }
  0x9f   :  { %v342_v61 = vsel %vm271_vm2, %v253_v54, %v290_v55  ;;  %v80_v63 = vpop.permute.xlu0 %79  ;;  %v650_v0 = vcombine.low %v341_v58, %v343_v60  ;;  %v651_v1 = vcombine.high %v341_v58, %v343_v60 }
  0xa0   :  { %v634_v2 = vcombine.low %v340_v59, %v342_v61  ;;  %v635_v3 = vcombine.high %v340_v59, %v342_v61 }
  0xa1   :  { %v658_v6 = vrot.slane %v650_v0, %v3134_v30  ;;  %v665_v8 = vrot.slane %v651_v1, %v3134_v30 }
  0xa2   :  { %v642_v5 = vrot.slane %v634_v2, %v3134_v30  ;;  %v649_v7 = vrot.slane %v635_v3, %v3134_v30  ;;  %v92_v9 = vpop.permute.xlu1 %91 }
  0xa3   :  { %v88_v10 = vpop.permute.xlu0 %87 }
  0xa4   :  { %v667_v11 = vcombine.high %v642_v5, %v658_v6  ;;  %v666_v13 = vcombine.low %v642_v5, %v658_v6  ;;  %v682_v16 = vcombine.low %v649_v7, %v665_v8  ;;  %v683_v21 = vcombine.high %v649_v7, %v665_v8 }
  0xa6   :  { %v681_v14 = vrot.slane %v667_v11, %v3163_v56  ;;  %v3186_v15 = vrot.slane %v666_v13, %v3163_v56  ;;  %v132_v17 = vpop.permute.xlu1 %131  ;;  %v690_v20 = vrot.slane %v682_v16, %v3163_v56  ;;  %v697_v25 = vrot.slane %v683_v21, %v3163_v56 }
  0xa7   :  { %v128_v18 = vpop.permute.xlu0 %127  ;;  %v217_v26 = vsel %vm205_vm0, %v84_v62, %v132_v17 }
  0xa8   :  { %803 = vrot.lane.b32.xlu1 %v681_v14, %s3008_s28  ;;  %v699_v19 = vcombine.high %v3186_v15, %v3182_v12  ;;  %v700_v24 = vcombine.high %v681_v14, %v3004_v4  ;;  %v215_v27 = vsel %vm205_vm0, %v80_v63, %v128_v18  ;;  %v701_v33 = vcombine.high %v690_v20, %v3004_v4 }
  0xa9   :  { %v702_v44 = vcombine.high %v697_v25, %v3004_v4 }
  0xaa   :  { %799 = vrot.lane.b32.xlu0 %v699_v19, %s3009_s29  ;;  %v140_v22 = vpop.permute.xlu1 %139 }
  0xab   :  { %v136_v23 = vpop.permute.xlu0 %135  ;;  %v221_v36 = vsel %vm205_vm0, %v92_v9, %v140_v22 }
  0xac   :  { %811 = vrot.lane.b32.xlu1 %v690_v20, %s3010_s30  ;;  %v219_v37 = vsel %vm205_vm0, %v88_v10, %v136_v23 }
  0xae   :  { %807 = vrot.lane.b32.xlu0 %v700_v24, %s3011_s4  ;;  %v180_v28 = vpop.permute.xlu1 %179 }
  0xaf   :  { %v176_v29 = vpop.permute.xlu0 %175  ;;  %v234_v31 = vsel %vm222_vm1, %v217_v26, %v180_v28 }
  0xb0   :  { %v232_v32 = vsel %vm222_vm1, %v215_v27, %v176_v29  ;;  %819 = vrot.lane.b32.xlu1 %v697_v25, %s3012_s5  ;;  %v288_v34 = vrot.slane %v234_v31, 7  ;;  %v325_v61 = vrot.slane %v234_v31, 5 }
  0xb1   :  { %v285_v35 = vrot.slane %v232_v32, 7  ;;  %v324_v62 = vrot.slane %v232_v32, 5 }
  0xb2   :  { %815 = vrot.lane.b32.xlu0 %v701_v33, %s3013_s6  ;;  %v188_v40 = vpop.permute.xlu1 %187  ;;  %v289_v49 = vsel %vm271_vm2, %v287_v45, %v288_v34  ;;  %v349_v7 = vsel %vm271_vm2, %v288_v34, %v325_v61 }
  0xb3   :  { %v184_v41 = vpop.permute.xlu0 %183  ;;  %v238_v42 = vsel %vm222_vm1, %v221_v36, %v188_v40  ;;  %v286_v52 = vsel %vm271_vm2, %v284_v47, %v285_v35  ;;  %v348_v8 = vsel %vm271_vm2, %v285_v35, %v324_v62 }
  0xb4   :  { %v236_v43 = vsel %vm222_vm1, %v219_v37, %v184_v41  ;;  %v294_v46 = vrot.slane %v238_v42, 7  ;;  %v327_v57 = vrot.slane %v238_v42, 5 }
  0xb5   :  { %v291_v48 = vrot.slane %v236_v43, 7  ;;  %v326_v59 = vrot.slane %v236_v43, 5 }
  0xb6   :  { %823 = vrot.lane.b32.xlu0 %v702_v44, %s3014_s7  ;;  %v295_v54 = vsel %vm271_vm2, %v293_v53, %v294_v46  ;;  %v3222_v38 = vpop.permute.xlu1 %63  ;;  %v351_v51 = vsel %vm271_vm2, %v294_v46, %v327_v57 }
  0xb7   :  { %v292_v58 = vsel %vm271_vm2, %v290_v55, %v291_v48  ;;  %v3224_v45 = vpop.permute.xlu0 %61  ;;  %v719_v39 = vcombine.low %v289_v49, %v295_v54  ;;  %v720_v60 = vcombine.high %v289_v49, %v295_v54  ;;  %v350_v55 = vsel %vm271_vm2, %v291_v48, %v326_v59 }
  0xb8   :  { %v703_v47 = vcombine.low %v286_v52, %v292_v58  ;;  %v704_v63 = vcombine.high %v286_v52, %v292_v58  ;;  %v780_v10 = vcombine.low %v349_v7, %v351_v51  ;;  %v772_v11 = vcombine.low %v348_v8, %v350_v55 }
  0xb9   :  { %v727_v53 = vrot.slane %v719_v39, %v3134_v30  ;;  %v734_v0 = vrot.slane %v720_v60, %v3134_v30 }
  0xba   :  { %v711_v50 = vrot.slane %v703_v47, %v3134_v30  ;;  %v3231_v1 = vpop.permute.xlu1 %67  ;;  %v718_v3 = vrot.slane %v704_v63, %v3134_v30  ;;  %v779_v21 = vrot.slane %v772_v11, %v3134_v30  ;;  %v787_v22 = vrot.slane %v780_v10, %v3134_v30 }
  0xbb   :  { %v3233_v2 = vpop.permute.xlu0 %65 }
  0xbc   :  { %v736_v5 = vcombine.high %v711_v50, %v727_v53  ;;  %v735_v6 = vcombine.low %v711_v50, %v727_v53  ;;  %v752_v9 = vcombine.high %v718_v3, %v734_v0  ;;  %v751_v14 = vcombine.low %v718_v3, %v734_v0 }
  0xbd   :  { %v788_v27 = vcombine.low %v779_v21, %v787_v22 }
  0xbe   :  { %v750_v13 = vrot.slane %v736_v5, %v3163_v56  ;;  %v72_v16 = vpop.permute.xlu1 %71  ;;  %v766_v18 = vrot.slane %v752_v9, %v3163_v56  ;;  %v743_v19 = vrot.slane %v735_v6, %v3163_v56  ;;  %v759_v20 = vrot.slane %v751_v14, %v3163_v56 }
  0xbf   :  { %v70_v17 = vpop.permute.xlu0 %69  ;;  %v795_v33 = vrot.slane %v788_v27, %v3163_v56 }
  0xc0   :  { %835 = vrot.lane.b32.xlu1 %v750_v13, %s3015_s8  ;;  %851 = vrot.lane.b32.xlu0 %v766_v18, %s3016_s9  ;;  %v768_v25 = vcombine.high %v743_v19, %v3182_v12  ;;  %v767_v26 = vcombine.low %v743_v19, %v3182_v12  ;;  %v769_v31 = vcombine.high %v750_v13, %v3004_v4 }
  0xc1   :  { %v771_v32 = vcombine.high %v766_v18, %v3004_v4  ;;  %v770_v36 = vcombine.high %v759_v20, %v3004_v4  ;;  %v796_v37 = vcombine.low %v795_v33, %v3182_v12  ;;  %v797_v42 = vcombine.high %v795_v33, %v3182_v12 }
  0xc2   :  { %v3246_v23 = vpop.permute.xlu1 %75 }
  0xc3   :  { %v3248_v24 = vpop.permute.xlu0 %73 }
  0xc4   :  { %843 = vrot.lane.b32.xlu1 %v759_v20, %s3017_s10  ;;  %831 = vrot.lane.b32.xlu0 %v768_v25, %s3018_s11 }
  0xc6   :  { %v112_v28 = vpop.permute.xlu1 %111 }
  0xc7   :  { %v110_v29 = vpop.permute.xlu0 %109  ;;  %v207_v52 = vsel %vm205_vm0, %v3222_v38, %v112_v28 }
  0xc8   :  { %827 = vrot.lane.b32.xlu1 %v767_v26, %s3019_s12  ;;  %839 = vrot.lane.b32.xlu0 %v769_v31, %s3020_s13  ;;  %v206_v49 = vsel %vm205_vm0, %v3224_v45, %v110_v29 }
  0xca   :  { %v116_v34 = vpop.permute.xlu1 %115 }
  0xcb   :  { %v114_v35 = vpop.permute.xlu0 %113  ;;  %v209_v54 = vsel %vm205_vm0, %v3231_v1, %v116_v34 }
  0xcc   :  { %855 = vrot.lane.b32.xlu1 %v771_v32, %s3021_s14  ;;  %847 = vrot.lane.b32.xlu0 %v770_v36, %s3022_s15  ;;  %v208_v57 = vsel %vm205_vm0, %v3233_v2, %v114_v35 }
  0xce   :  { %v120_v40 = vpop.permute.xlu1 %119 }
  0xcf   :  { %v118_v41 = vpop.permute.xlu0 %117  ;;  %v211_v47 = vsel %vm205_vm0, %v72_v16, %v120_v40 }
  0xd0   :  { %859 = vrot.lane.b32.xlu1 %v796_v37, %s3023_s16  ;;  %863 = vrot.lane.b32.xlu0 %v797_v42, %s3024_s17  ;;  %v210_v45 = vsel %vm205_vm0, %v70_v17, %v118_v41 }
  0xd2   :  { %v124_v43 = vpop.permute.xlu1 %123 }
  0xd3   :  { %v122_v44 = vpop.permute.xlu0 %121  ;;  %v213_v8 = vsel %vm205_vm0, %v3246_v23, %v124_v43 }
  0xd4   :  { %v212_v9 = vsel %vm205_vm0, %v3248_v24, %v122_v44  ;;  %vm626_vm0 = vcmask 1014784  }
  0xd6   :  { %v160_v46 = vpop.permute.xlu1 %159 }
  0xd7   :  { %v158_v48 = vpop.permute.xlu0 %157  ;;  %v3276_v60 = vsel %vm222_vm1, %v207_v52, %v160_v46 }
  0xd8   :  { %v223_v58 = vsel %vm222_vm1, %v206_v49, %v158_v48  ;;  %v273_v50 = vrot.slane %v3276_v60, 7 }
  0xd9   :  { %v247_v62 = vrot.slane %v223_v58, 1  ;;  %v272_v63 = vrot.slane %v223_v58, 7 }
  0xda   :  { %v164_v59 = vpop.permute.xlu1 %163 }
  0xdb   :  { %v162_v39 = vpop.permute.xlu0 %161  ;;  %v3281_v61 = vsel %vm222_vm1, %v209_v54, %v164_v59  ;;  %v336_v10 = vsel %vm271_vm2, %v247_v62, %v272_v63  ;;  %v274_v11 = vsel %vm271_vm2, %v272_v63, %v273_v50 }
  0xdc   :  { %v225_v38 = vsel %vm222_vm1, %v208_v57, %v162_v39  ;;  %v276_v51 = vrot.slane %v3281_v61, 7  ;;  %v321_v54 = vrot.slane %v3281_v61, 5  ;;  %v320_v39 = vrot.slane %v3276_v60, 5 }
  0xdd   :  { %v275_v55 = vrot.slane %v225_v38, 7  ;;  %v248_v3 = vrot.slane %v225_v38, 1 }
  0xde   :  { %v168_v53 = vpop.permute.xlu1 %167  ;;  %v345_v63 = vsel %vm271_vm2, %v276_v51, %v321_v54 }
  0xdf   :  { %v166_v0 = vpop.permute.xlu0 %165  ;;  %v228_v1 = vsel %vm222_vm1, %v211_v47, %v168_v53  ;;  %v277_v18 = vsel %vm271_vm2, %v275_v55, %v276_v51  ;;  %v337_v19 = vsel %vm271_vm2, %v248_v3, %v275_v55 }
  0xe0   :  { %v227_v2 = vsel %vm222_vm1, %v210_v45, %v166_v0  ;;  %v279_v5 = vrot.slane %v228_v1, 7  ;;  %v322_v47 = vrot.slane %v228_v1, 5  ;;  %v344_v1 = vsel %vm271_vm2, %v273_v50, %v320_v39 }
  0xe1   :  { %v249_v6 = vrot.slane %v227_v2, 1  ;;  %v278_v7 = vrot.slane %v227_v2, 7 }
  0xe2   :  { %v172_v16 = vpop.permute.xlu1 %171  ;;  %v346_v2 = vsel %vm271_vm2, %v279_v5, %v322_v47 }
  0xe3   :  { %v280_v13 = vsel %vm271_vm2, %v278_v7, %v279_v5  ;;  %v338_v14 = vsel %vm271_vm2, %v249_v6, %v278_v7  ;;  %v170_v17 = vpop.permute.xlu0 %169  ;;  %v230_v21 = vsel %vm222_vm1, %v213_v8, %v172_v16  ;;  %v506_v7 = vcombine.low %v344_v1, %v346_v2 }
  0xe4   :  { %v352_v20 = vcombine.low %v336_v10, %v338_v14  ;;  %v229_v22 = vsel %vm222_vm1, %v212_v9, %v170_v17  ;;  %v437_v23 = vcombine.low %v274_v11, %v280_v13  ;;  %v282_v24 = vrot.slane %v230_v21, 7 }
  0xe5   :  { %v250_v25 = vrot.slane %v229_v22, 1  ;;  %v281_v26 = vrot.slane %v229_v22, 7  ;;  %v353_v27 = vcombine.high %v336_v10, %v338_v14  ;;  %v323_v57 = vrot.slane %v230_v21, 5 }
  0xe6   :  { %v360_v34 = vrot.slane %v352_v20, %v3134_v30  ;;  %v445_v35 = vrot.slane %v437_v23, %v3134_v30  ;;  %v438_v45 = vcombine.high %v274_v11, %v280_v13  ;;  %v513_v11 = vrot.slane %v506_v7, %v3134_v30 }
  0xe7   :  { %v283_v28 = vsel %vm271_vm2, %v281_v26, %v282_v24  ;;  %v339_v29 = vsel %vm271_vm2, %v250_v25, %v281_v26  ;;  %v367_v40 = vrot.slane %v353_v27, %v3134_v30  ;;  %v347_v61 = vsel %vm271_vm2, %v282_v24, %v323_v57 }
  0xe8   :  { %v368_v31 = vcombine.low %v337_v19, %v339_v29  ;;  %v369_v32 = vcombine.high %v337_v19, %v339_v29  ;;  %v453_v33 = vcombine.low %v277_v18, %v283_v28  ;;  %v454_v58 = vcombine.high %v277_v18, %v283_v28 }
  0xe9   :  { %v514_v3 = vcombine.low %v345_v63, %v347_v61  ;;  %v452_v6 = vrot.slane %v438_v45, %v3134_v30  ;;  %v698_v26 = vcombine.low %v3186_v15, %v3182_v12  ;;  %vm628_vm1 = vcmask 113664  }
  0xea   :  { %v376_v36 = vrot.slane %v368_v31, %v3134_v30  ;;  %v461_v37 = vrot.slane %v453_v33, %v3134_v30  ;;  %v383_v41 = vrot.slane %v369_v32, %v3134_v30  ;;  %v468_v55 = vrot.slane %v454_v58, %v3134_v30 }
  0xeb   :  { %v521_v50 = vrot.slane %v514_v3, %v3134_v30  ;;  %vm630_vm2 = vcmask 261120  }
  0xec   :  { %v393_v42 = vcombine.high %v360_v34, %v376_v36  ;;  %v469_v43 = vcombine.low %v445_v35, %v461_v37  ;;  %v409_v44 = vcombine.high %v367_v40, %v383_v41  ;;  %v392_v52 = vcombine.low %v360_v34, %v376_v36 }
  0xed   :  { %v470_v0 = vcombine.high %v445_v35, %v461_v37  ;;  %v486_v9 = vcombine.high %v452_v6, %v468_v55  ;;  %v408_v13 = vcombine.low %v367_v40, %v383_v41  ;;  %v522_v14 = vcombine.low %v513_v11, %v521_v50 }
  0xee   :  { %v407_v46 = vrot.slane %v393_v42, %v3163_v56  ;;  %v477_v48 = vrot.slane %v469_v43, %v3163_v56  ;;  %v423_v49 = vrot.slane %v409_v44, %v3163_v56  ;;  %v3320_v62 = vrot.slane %v392_v52, %v3163_v56 }
  0xef   :  { %v484_v8 = vrot.slane %v470_v0, %v3163_v56  ;;  %v500_v10 = vrot.slane %v486_v9, %v3163_v56  ;;  %v485_v17 = vcombine.low %v452_v6, %v468_v55  ;;  %v416_v18 = vrot.slane %v408_v13, %v3163_v56 }
  0xf0   :  { %537 = vrot.lane.b32.xlu1 %v407_v46, %s3008_s28  ;;  %v501_v59 = vcombine.low %v477_v48, %v3182_v12  ;;  %v436_v38 = vcombine.high %v423_v49, %v3004_v4  ;;  %v502_v53 = vcombine.high %v477_v48, %v3182_v12  ;;  %v433_v51 = vcombine.high %v3320_v62, %v3182_v12  ;;  %s3036_s28 = smov 38  }
  0xf1   :  { %v434_v60 = vcombine.high %v407_v46, %v3004_v4  ;;  %v503_v5 = vcombine.high %v484_v8, %v3004_v4  ;;  %v505_v16 = vcombine.high %v500_v10, %v3004_v4  ;;  %v529_v19 = vrot.slane %v522_v14, %v3163_v56 }
  0xf2   :  { %561 = vrot.lane.b32.xlu0 %v501_v59, %s3019_s12  ;;  %v493_v20 = vrot.slane %v485_v17, %v3163_v56  ;;  %v435_v22 = vcombine.high %v416_v18, %v3004_v4 }
  0xf3   :  { %v530_v21 = vcombine.low %v529_v19, %v3182_v12  ;;  %v531_v24 = vcombine.high %v529_v19, %v3182_v12 }
  0xf4   :  { %557 = vrot.lane.b32.xlu1 %v436_v38, %s3014_s7  ;;  %v504_v23 = vcombine.high %v493_v20, %v3004_v4 }
  0xf6   :  { %565 = vrot.lane.b32.xlu0 %v502_v53, %s3018_s11  ;;  %s3046_s11 = smov 48  }
  0xf8   :  { %533 = vrot.lane.b32.xlu1 %v433_v51, %s3009_s29  ;;  %s3037_s29 = smov 56  }
  0xfa   :  { %569 = vrot.lane.b32.xlu0 %v484_v8, %s3015_s8  ;;  %s3043_s8 = smov 114  }
  0xfc   :  { %541 = vrot.lane.b32.xlu1 %v434_v60, %s3011_s4  ;;  %s3039_s4 = smov 20  }
  0xfe   :  { %573 = vrot.lane.b32.xlu0 %v503_v5, %s3020_s13  ;;  %s3047_s13 = smov 64  }
 0x100   :  { %585 = vrot.lane.b32.xlu1 %v500_v10, %s3016_s9  ;;  %s3044_s9 = smov 4  }
 0x102   :  { %589 = vrot.lane.b32.xlu0 %v505_v16, %s3021_s14  ;;  %s3048_s14 = smov 80  }
 0x104   :  { %545 = vrot.lane.b32.xlu1 %v416_v18, %s3010_s30  ;;  %v432_v18 = vcombine.low %v3320_v62, %v3182_v12  ;;  %s3038_s30 = smov 2  }
 0x106   :  { %577 = vrot.lane.b32.xlu0 %v493_v20, %s3017_s10  ;;  %s3045_s10 = smov 60  }
 0x108   :  { %593 = vrot.lane.b32.xlu1 %v530_v21, %s3023_s16 }
 0x10a   :  { %549 = vrot.lane.b32.xlu0 %v435_v22, %s3013_s6 }
 0x10c   :  { %581 = vrot.lane.b32.xlu1 %v504_v23, %s3022_s15  ;;  %s3049_s15 = smov 96  }
 0x10e   :  { %597 = vrot.lane.b32.xlu0 %v531_v24, %s3024_s17 }
 0x110   :  { %553 = vrot.lane.b32.xlu1 %v423_v49, %s3012_s5 }
 0x11a   :  { %v804_v25 = vpop.permute.xlu1 %803 }
 0x11c   :  { %v800_v27 = vpop.permute.xlu0 %799 }
 0x11d   :  { %v866_v28 = vsel %vm600_vm3, %v698_v26, %v800_v27 }
 0x11e   :  { %v867_v29 = vsel %vm602_vm4, %v866_v28, %v804_v25  ;;  %v812_v32 = vpop.permute.xlu1 %811 }
 0x120   :  { %v808_v31 = vpop.permute.xlu0 %807 }
 0x121   :  { %v868_v33 = vsel %vm604_vm5, %v867_v29, %v808_v31 }
 0x122   :  { %v869_v34 = vsel %vm606_vm6, %v868_v33, %v812_v32  ;;  %v820_v15 = vpop.permute.xlu1 %819 }
 0x124   :  { %v816_v35 = vpop.permute.xlu0 %815 }
 0x125   :  { %v870_v36 = vsel %vm608_vm7, %v869_v34, %v816_v35 }
 0x126   :  { %v871_v40 = vsel %vm610_vm8, %v870_v36, %v820_v15 }
 0x128   :  { %v824_v37 = vpop.permute.xlu0 %823 }
 0x129   :  { %v872_v41 = vsel %vm3929_vm9, %v871_v40, %v824_v37  ;;  %vm632_vm9 = vcmask 408576  }
 0x12a   :  { %886 = vrot.lane.b32.xlu0 %v872_v41, %s3025_s18 }
 0x132   :  { %v836_v42 = vpop.permute.xlu1 %835  ;;  %v852_v43 = vpop.permute.xlu0 %851 }
 0x136   :  { %v844_v44 = vpop.permute.xlu1 %843  ;;  %v832_v46 = vpop.permute.xlu0 %831 }
 0x13a   :  { %v828_v48 = vpop.permute.xlu1 %827  ;;  %v840_v52 = vpop.permute.xlu0 %839 }
 0x13b   :  { %v873_v49 = vsel %vm614_vm10, %v824_v37, %v828_v48 }
 0x13c   :  { %v874_v54 = vsel %vm616_vm11, %v873_v49, %v832_v46  ;;  %v3030_v49 = vmov 0  }
 0x13d   :  { %v875_v57 = vsel %vm618_vm12, %v874_v54, %v836_v42  ;;  %2949 = vset.pattern.permute.xlu1 %v3030_v49  ;;  %2950 = vset.pattern.permute.xlu0 %v3030_v49 }
 0x13e   :  { %v876_v58 = vsel %vm620_vm13, %v875_v57, %v840_v52  ;;  %v856_v59 = vpop.permute.xlu1 %855  ;;  %v848_v47 = vpop.permute.xlu0 %847  ;;  %v1096_v52 = vld [vmem:[%s3927_s2] sm:$0xff] }
 0x13f   :  { %v877_v39 = vsel %vm622_vm14, %v876_v58, %v844_v44  ;;  %v880_v63 = vsel %vm628_vm1, %v852_v43, %v856_v59 }
 0x140   :  { %v878_v45 = vsel %vm624_vm15, %v877_v39, %v848_v47 }
 0x141   :  { %v879_v38 = vsel %vm626_vm0, %v878_v45, %v852_v43 }
 0x142   :  { %v860_v61 = vpop.permute.xlu1 %859  ;;  %888 = vrot.lane.b32.xlu1 %v879_v38, %s3025_s18  ;;  %v864_v0 = vpop.permute.xlu0 %863 }
 0x143   :  { %v881_v53 = vsel %vm630_vm2, %v880_v63, %v860_v61 }
 0x144   :  { %v882_v55 = vsel %vm632_vm9, %v881_v53, %v864_v0 }
 0x145   :  { %890 = vrot.lane.b32.xlu0 %v882_v55, %s3025_s18 }
 0x162   :  { %v538_v1 = vpop.permute.xlu1 %537 }
 0x164   :  { %v562_v2 = vpop.permute.xlu0 %561 }
 0x166   :  { %v558_v3 = vpop.permute.xlu1 %557 }
 0x167   :  { %v615_v6 = vsel %vm614_vm10, %v558_v3, %v562_v2 }
 0x168   :  { %v566_v51 = vpop.permute.xlu0 %565 }
 0x169   :  { %v617_v8 = vsel %vm616_vm11, %v615_v6, %v566_v51  ;;  %vm965_vm11 = vcmask 900096  }
 0x16a   :  { %v534_v7 = vpop.permute.xlu1 %533 }
 0x16b   :  { %v601_v20 = vsel %vm600_vm3, %v432_v18, %v534_v7  ;;  %vm3930_vm3 = vcmask 1031168  }
 0x16c   :  { %v570_v9 = vpop.permute.xlu0 %569  ;;  %v603_v23 = vsel %vm602_vm4, %v601_v20, %v538_v1  ;;  %vm892_vm4 = vcmask 556032  }
 0x16d   :  { %v619_v60 = vsel %vm618_vm12, %v617_v8, %v570_v9  ;;  %vm3931_vm12 = vmmov %vm3930_vm3 }
 0x16e   :  { %v542_v50 = vpop.permute.xlu1 %541 }
 0x16f   :  { %v605_v26 = vsel %vm604_vm5, %v603_v23, %v542_v50  ;;  %vm900_vm5 = vcmask 64512  }
 0x170   :  { %v574_v5 = vpop.permute.xlu0 %573 }
 0x171   :  { %v621_v10 = vsel %vm620_vm13, %v619_v60, %v574_v5  ;;  %vm3932_vm13 = vmmov %vm3930_vm3 }
 0x172   :  { %v586_v11 = vpop.permute.xlu1 %585 }
 0x174   :  { %v590_v13 = vpop.permute.xlu0 %589 }
 0x175   :  { %v629_v24 = vsel %vm628_vm1, %v586_v11, %v590_v13  ;;  %vm3031_vm1 = vmmov 1  }
 0x176   :  { %v546_v14 = vpop.permute.xlu1 %545 }
 0x177   :  { %v607_v12 = vsel %vm606_vm6, %v605_v26, %v546_v14 }
 0x178   :  { %v578_v16 = vpop.permute.xlu0 %577 }
 0x179   :  { %v623_v17 = vsel %vm622_vm14, %v621_v10, %v578_v16  ;;  %vm989_vm14 = vcmask 891904  }
 0x17a   :  { %v594_v19 = vpop.permute.xlu1 %593 }
 0x17b   :  { %v631_v27 = vsel %vm630_vm2, %v629_v24, %v594_v19 }
 0x17c   :  { %v550_v21 = vpop.permute.xlu0 %549 }
 0x17d   :  { %v609_v31 = vsel %vm608_vm7, %v607_v12, %v550_v21 }
 0x17e   :  { %v582_v22 = vpop.permute.xlu1 %581 }
 0x17f   :  { %v625_v25 = vsel %vm624_vm15, %v623_v17, %v582_v22  ;;  %vm1036_vm15 = vcmask 752640  }
 0x180   :  { %v3398_v28 = vsel %vm626_vm0, %v625_v25, %v586_v11  ;;  %v598_v29 = vpop.permute.xlu0 %597  ;;  %vm1060_vm0 = vcmask 744448  }
 0x181   :  { %v633_v62 = vsel %vm632_vm9, %v631_v27, %v598_v29  ;;  %vm918_vm9 = vcmask 1039360  }
 0x182   :  { %v554_v32 = vpop.permute.xlu1 %553 }
 0x183   :  { %v611_v33 = vsel %vm610_vm8, %v609_v31, %v554_v32 }
 0x184   :  { %v3405_v34 = vsel %vm3930_vm3, %v611_v33, %v558_v3  ;;  %vm2790_vm3 = vmpackc.low %vm3031_vm1, %vm900_vm5 }
 0x185   :  { %1024 = vrot.lane.b32.xlu1 %v3405_v34, %s3026_s19  ;;  %1001 = vrot.lane.b32.xlu0 %v3405_v34, %s3012_s5 }
 0x189   :  { %1048 = vrot.lane.b32.xlu0 %v3405_v34, %s3027_s20 }
 0x18d   :  { %1074 = vrot.lane.b32.xlu0 %v3398_v28, %s3013_s6 }
 0x19c   :  { %v887_v35 = vpop.permute.xlu0 %886 }
 0x19d   :  { %v3416_v36 = vsel %vm892_vm4, %v633_v62, %v887_v35 }
 0x19e   :  { %v2859_v15 = vpack.i.bf16 %v3416_v36, %v3398_v28 }
 0x1a0   :  { %2860 = vrot.lane.b32.xlu1 %v2859_v15, %s3002_s26 }
 0x1a4   :  { %2870 = vrot.lane.b32.xlu1 %v2859_v15, %s3014_s7 }
 0x1b4   :  { %v889_v37 = vpop.permute.xlu1 %888 }
 0x1b5   :  { %v3423_v40 = vsel %vm892_vm4, %v887_v35, %v889_v37 }
 0x1b6   :  { %v2879_v41 = vpack.i.bf16 %v3423_v40, %v3405_v34 }
 0x1b7   :  { %v3431_v42 = vpop.permute.xlu0 %890 }
 0x1b8   :  { %2880 = vrot.lane.b32.xlu1 %v2879_v41, %s3014_s7  ;;  %2865 = vrot.lane.b32.xlu0 %v2879_v41, %s3002_s26  ;;  %v3437_v43 = vsel %vm892_vm4, %v889_v37, %v3431_v42  ;;  %v901_v44 = vsel %vm900_vm5, %v3431_v42, 0.0  ;;  %vm3933_vm4 = vmmov %vm3931_vm12 }
 0x1b9   :  { %v2914_v46 = vpack.i.bf16 %v901_v44, %v3437_v43  ;;  %v2934_v48 = vpack.i.bf16 %v3437_v43, %v3423_v40  ;;  %vm3934_vm5 = vmmov %vm3933_vm4 }
 0x1bc   :  { %2890 = vrot.lane.b32.xlu1 %v2859_v15, %s3028_s21  ;;  %2875 = vrot.lane.b32.xlu0 %v2859_v15, %s3029_s22 }
 0x1c0   :  { %2900 = vrot.lane.b32.xlu1 %v2879_v41, %s3028_s21  ;;  %2885 = vrot.lane.b32.xlu0 %v2879_v41, %s3029_s22 }
 0x1c4   :  { %2905 = vrot.lane.b32.xlu1 %v2859_v15, %s3026_s19  ;;  %2895 = vrot.lane.b32.xlu0 %v2859_v15, %s3012_s5 }
 0x1c8   :  { %2910 = vrot.lane.b32.xlu0 %v2859_v15, %s3027_s20  ;;  %1011 = vrot.lane.b32.xlu1 %v901_v44, %s3012_s5 }
 0x1cc   :  { %1072 = vrot.lane.b32.xlu0 %v3405_v34, %s3013_s6  ;;  %2915 = vrot.lane.b32.xlu1 %v2914_v46, %s3002_s26  ;;  %s3033_s26 = smov 76  }
 0x1d0   :  { %1034 = vrot.lane.b32.xlu0 %v901_v44, %s3026_s19  ;;  %1076 = vrot.lane.b32.xlu1 %v3416_v36, %s3013_s6 }
 0x1d4   :  { %2925 = vrot.lane.b32.xlu0 %v2914_v46, %s3029_s22  ;;  %2920 = vrot.lane.b32.xlu1 %v2914_v46, %s3014_s7  ;;  %s3042_s7 = smov 40  }
 0x1d8   :  { %2935 = vrot.lane.b32.xlu0 %v2934_v48, %s3012_s5  ;;  %2930 = vrot.lane.b32.xlu1 %v2914_v46, %s3028_s21  ;;  %s3040_s5 = smov 58  }
 0x1dc   :  { %2940 = vrot.lane.b32.xlu0 %v2934_v48, %s3026_s19  ;;  %2945 = vrot.lane.b32.xlu1 %v2934_v48, %s3027_s20 }
 0x1e0   :  { %1078 = vrot.lane.b32.xlu0 %v3423_v40, %s3013_s6  ;;  %1058 = vrot.lane.b32.xlu1 %v901_v44, %s3027_s20 }
 0x1e4   :  { %1082 = vrot.lane.b32.xlu0 %v901_v44, %s3013_s6  ;;  %1080 = vrot.lane.b32.xlu1 %v3437_v43, %s3013_s6  ;;  %s3041_s6 = smov 22  }
 0x1e8   :  { %1099 = vperm.xlu1 %2949, %v1096_v52  }
 0x1f7   :  { %v3466_v54 = vpop.permute.xlu1 %1024  ;;  %v1002_v45 = vpop.permute.xlu0 %1001 }
 0x1fb   :  { %v1049_v38 = vpop.permute.xlu0 %1048 }
 0x1ff   :  { %v3476_v63 = vpop.permute.xlu0 %1074 }
 0x212   :  { %v3468_v57 = vpop.permute.xlu1 %2860 }
 0x213   :  { %v2863_v58 = vunpack.i.h.bf16 %v3468_v57  ;;  %v2862_v59 = vunpack.i.l.bf16 %v3468_v57  ;;  %v3562_v57 = vld [vmem:[%s3926_s1] sm:$0xff]  ;;  %s3032_s1 = smov 74  }
 0x215   :  { %v920_v39 = vsel %vm918_vm9, %v2862_v59, %v2863_v58 }
 0x216   :  { %v2757_v47 = vpack.c.bf16 %v920_v39, %v3398_v28  ;;  %v3478_v61 = vpop.permute.xlu1 %2870 }
 0x217   :  { %v2873_v1 = vunpack.i.h.bf16 %v3478_v61  ;;  %v2872_v2 = vunpack.i.l.bf16 %v3478_v61 }
 0x218   :  { %2758 = vmatprep.subr.bf16.mxu0 %v2757_v47 }
 0x219   :  { %v943_v50 = vsel %vm3931_vm12, %v2872_v2, %v2873_v1  ;;  %vm1980_vm12 = vcmask 392192  }
 0x22a   :  { %v3480_v53 = vpop.permute.xlu1 %2880  ;;  %v3482_v0 = vpop.permute.xlu0 %2865 }
 0x22b   :  { %v2867_v55 = vunpack.i.l.bf16 %v3482_v0  ;;  %v2882_v60 = vunpack.i.l.bf16 %v3480_v53  ;;  %v2868_v37 = vunpack.i.h.bf16 %v3482_v0 }
 0x22d   :  { %v919_v3 = vsel %vm918_vm9, %v2867_v55, %v2862_v59  ;;  %v942_v19 = vsel %vm3932_vm13, %v2882_v60, %v2872_v2  ;;  %v921_v0 = vsel %vm918_vm9, %v2863_v58, %v2868_v37  ;;  %vm1982_vm13 = vcmask 523264  }
 0x22e   :  { %v3488_v51 = vpop.permute.xlu1 %2890  ;;  %v3490_v6 = vpop.permute.xlu0 %2875  ;;  %v2759_v7 = vpack.c.bf16 %v919_v3, %v3405_v34 }
 0x22f   :  { %v2878_v8 = vunpack.i.h.bf16 %v3490_v6  ;;  %v2877_v9 = vunpack.i.l.bf16 %v3490_v6  ;;  %v2893_v16 = vunpack.i.h.bf16 %v3488_v51  ;;  %v2892_v17 = vunpack.i.l.bf16 %v3488_v51 }
 0x230   :  { %2760 = vmatpush1.bf16.msra.mxu0 %v2759_v7 }
 0x231   :  { %v967_v5 = vsel %vm965_vm11, %v2877_v9, %v2878_v8  ;;  %v991_v26 = vsel %vm989_vm14, %v2892_v17, %v2893_v16 }
 0x232   :  { %v3502_v10 = vpop.permute.xlu1 %2900  ;;  %v3504_v11 = vpop.permute.xlu0 %2885  ;;  %v2761_v13 = vpack.c.bf16 %v967_v5, %v943_v50 }
 0x233   :  { %v2887_v14 = vunpack.i.l.bf16 %v3504_v11  ;;  %v2902_v18 = vunpack.i.l.bf16 %v3502_v10  ;;  %v2888_v58 = vunpack.i.h.bf16 %v3504_v11 }
 0x234   :  { %2762 = vmatprep.subr.bf16.mxu0 %v2761_v13 }
 0x235   :  { %v966_v20 = vsel %vm965_vm11, %v2887_v14, %v2877_v9  ;;  %v990_v27 = vsel %vm989_vm14, %v2902_v18, %v2892_v17  ;;  %v2775_v9 = vpack.c.bf16 %v921_v0, %v3416_v36  ;;  %v2883_v36 = vunpack.i.h.bf16 %v3480_v53 }
 0x236   :  { %v3512_v21 = vpop.permute.xlu1 %2905  ;;  %v3514_v22 = vpop.permute.xlu0 %2895  ;;  %v2763_v23 = vpack.c.bf16 %v966_v20, %v942_v19  ;;  %v2903_v20 = vunpack.i.h.bf16 %v3502_v10 }
 0x237   :  { %v2898_v24 = vunpack.i.h.bf16 %v3514_v22  ;;  %v2897_v25 = vunpack.i.l.bf16 %v3514_v22  ;;  %v2908_v28 = vunpack.i.h.bf16 %v3512_v21  ;;  %v2907_v29 = vunpack.i.l.bf16 %v3512_v21 }
 0x238   :  { %2764 = vmatpush1.bf16.msra.mxu0 %v2763_v23 }
 0x239   :  { %v1014_v12 = vsel %vm610_vm8, %v2897_v25, %v2898_v24  ;;  %v1013_v62 = vsel %vm610_vm8, %v1002_v45, %v2897_v25  ;;  %v1038_v41 = vsel %vm1036_vm15, %v2907_v29, %v2908_v28  ;;  %v1037_v46 = vsel %vm1036_vm15, %v3466_v54, %v2907_v29 }
 0x23a   :  { %v3528_v31 = vpop.permute.xlu1 %1011  ;;  %v3530_v32 = vpop.permute.xlu0 %2910  ;;  %v2765_v33 = vpack.c.bf16 %v1014_v12, %v991_v26  ;;  %v2767_v34 = vpack.c.bf16 %v1013_v62, %v990_v27 }
 0x23b   :  { %v2913_v35 = vunpack.i.h.bf16 %v3530_v32  ;;  %v2912_v15 = vunpack.i.l.bf16 %v3530_v32 }
 0x23c   :  { %2766 = vmatprep.subr.bf16.mxu0 %v2765_v33 }
 0x23d   :  { %2768 = vmatpush1.bf16.msra.mxu0 %v2767_v34  ;;  %v1062_v44 = vsel %vm1060_vm0, %v2912_v15, %v2913_v35  ;;  %v1061_v48 = vsel %vm1060_vm0, %v1049_v38, %v2912_v15 }
 0x23e   :  { %v2916_v49 = vpop.permute.xlu1 %2915  ;;  %v1073_v52 = vpop.permute.xlu0 %1072  ;;  %v2769_v59 = vpack.c.bf16 %v1062_v44, %v1038_v41  ;;  %v2771_v39 = vpack.c.bf16 %v1061_v48, %v1037_v46  ;;  %v992_v46 = vsel %vm989_vm14, %v2893_v16, %v2903_v20 }
 0x23f   :  { %v2918_v47 = vunpack.i.h.bf16 %v2916_v49  ;;  %v2917_v45 = vunpack.i.l.bf16 %v2916_v49 }
 0x240   :  { %2770 = vmatprep.subr.bf16.mxu0 %v2769_v59 }
 0x241   :  { %2772 = vmatpush1.bf16.msra.mxu0 %v2771_v39  ;;  %v922_v55 = vsel %vm918_vm9, %v2868_v37, %v2917_v45  ;;  %v923_v2 = vsel %vm918_vm9, %v2917_v45, %v2918_v47  ;;  %v2789_v60 = vpack.c.bf16 %v2918_v47, %v3431_v42  ;;  %vm3935_vm9 = vmmov %vm3933_vm4 }
 0x242   :  { %v3549_v3 = vpop.permute.xlu1 %1076  ;;  %v3551_v54 = vpop.permute.xlu0 %1034  ;;  %v2773_v38 = vpack.c.bf16 %v922_v55, %v3423_v40  ;;  %v1084_v40 = vsel %vm608_vm7, %v1073_v52, %v3476_v63  ;;  %v2792_v50 = vpack.c.bf16 %v923_v2, %v3437_v43  ;;  %v968_v43 = vsel %vm965_vm11, %v2878_v8, %v2888_v58 }
 0x243   :  { %v1085_v7 = vsel %vm608_vm7, %v3476_v63, %v3549_v3 }
 0x244   :  { %1121 = vmatprep.subr.mxu0 %v1085_v7  ;;  %2774 = vmatprep.subr.bf16.mxu1 %v2773_v38 }
 0x245   :  { %1122 = vmatpush1.msra.mxu0 %v1084_v40  ;;  %2776 = vmatpush1.bf16.msra.mxu1 %v2775_v9 }
 0x246   :  { %v2921_v5 = vpop.permute.xlu1 %2920  ;;  %v2926_v13 = vpop.permute.xlu0 %2925  ;;  %2791 = vmatprep.subr.msk.bf16.mxu0 %vm2790_vm3, %v2789_v60  ;;  %2721 = vmatmul.mubr.msk.f32.vlgmr.msra.gmra.mrb[0].mxu0 %vm606_vm6, %v3562_v57 }
 0x247   :  { %v2923_v11 = vunpack.i.h.bf16 %v2921_v5  ;;  %v2922_v14 = vunpack.i.l.bf16 %v2921_v5  ;;  %v2928_v42 = vunpack.i.h.bf16 %v2926_v13  ;;  %v2927_v17 = vunpack.i.l.bf16 %v2926_v13  ;;  %2793 = vmatpush1.bf16.msra.mxu0 %v2792_v50  ;;  %1311 = vmatprep.mubr.f32.mxu0 %v3004_v4 }
 0x248   :  { %v944_v4 = vsel %vm3935_vm9, %v2873_v1, %v2883_v36 }
 0x249   :  { %v946_v63 = vsel %vm3933_vm4, %v2922_v14, %v2923_v11  ;;  %v2794_v53 = vpack.c.bf16 %v2928_v42, %v2923_v11  ;;  %v970_v18 = vsel %vm965_vm11, %v2927_v17, %v2928_v42  ;;  %v945_v19 = vsel %vm3934_vm5, %v2883_v36, %v2922_v14 }
 0x24a   :  { %v2796_v23 = vpack.c.bf16 %v970_v18, %v946_v63  ;;  %v2931_v25 = vpop.permute.xlu1 %2930  ;;  %v2936_v26 = vpop.permute.xlu0 %2935  ;;  %v969_v27 = vsel %vm965_vm11, %v2888_v58, %v2927_v17  ;;  %v2779_v33 = vpack.c.bf16 %v968_v43, %v944_v4  ;;  %vm1372_vm11 = vcmask 31744  }
 0x24b   :  { %v2933_v6 = vunpack.i.h.bf16 %v2931_v25  ;;  %v2932_v8 = vunpack.i.l.bf16 %v2931_v25  ;;  %v2938_v29 = vunpack.i.h.bf16 %v2936_v26  ;;  %v2937_v12 = vunpack.i.l.bf16 %v2936_v26  ;;  %2795 = vmatprep.subr.bf16.mxu0 %v2794_v53 }
 0x24c   :  { %v2777_v62 = vpack.c.bf16 %v969_v27, %v945_v19  ;;  %2797 = vmatpush1.bf16.msra.mxu0 %v2796_v23 }
 0x24d   :  { %v2798_v34 = vpack.c.bf16 %v3528_v31, %v2933_v6  ;;  %v994_v10 = vsel %vm989_vm14, %v2932_v8, %v2933_v6  ;;  %v1017_v15 = vsel %vm610_vm8, %v2938_v29, %v3528_v31  ;;  %v993_v37 = vsel %vm989_vm14, %v2903_v20, %v2932_v8 }
 0x24e   :  { %v2800_v61 = vpack.c.bf16 %v1017_v15, %v994_v10  ;;  %2778 = vmatprep.subr.bf16.mxu1 %v2777_v62  ;;  %v2946_v1 = vpop.permute.xlu1 %2945  ;;  %v2941_v41 = vpop.permute.xlu0 %2940  ;;  %v1016_v44 = vsel %vm610_vm8, %v2937_v12, %v2938_v29  ;;  %v1015_v48 = vsel %vm610_vm8, %v2898_v24, %v2937_v12  ;;  %vm1346_vm8 = vcmask 15360  }
 0x24f   :  { %2780 = vmatpush1.bf16.msra.mxu1 %v2779_v33  ;;  %v2948_v49 = vunpack.i.h.bf16 %v2946_v1  ;;  %v2947_v52 = vunpack.i.l.bf16 %v2946_v1  ;;  %v2943_v31 = vunpack.i.h.bf16 %v2941_v41  ;;  %v2942_v59 = vunpack.i.l.bf16 %v2941_v41  ;;  %2799 = vmatprep.subr.bf16.mxu0 %v2798_v34 }
 0x250   :  { %v2781_v39 = vpack.c.bf16 %v1016_v44, %v993_v37  ;;  %2801 = vmatpush1.bf16.msra.mxu0 %v2800_v61  ;;  %v2783_v47 = vpack.c.bf16 %v1015_v48, %v992_v46  ;;  %vm1984_vm14 = vcmask 654336  }
 0x251   :  { %v1040_v45 = vsel %vm1036_vm15, %v2942_v59, %v2943_v31  ;;  %v1064_v0 = vsel %vm1060_vm0, %v2947_v52, %v2948_v49  ;;  %v1039_v51 = vsel %vm1036_vm15, %v2908_v28, %v2942_v59  ;;  %v1063_v55 = vsel %vm1060_vm0, %v2913_v35, %v2947_v52 }
 0x252   :  { %2782 = vmatprep.subr.bf16.mxu1 %v2781_v39  ;;  %v1059_v16 = vpop.permute.xlu1 %1058  ;;  %v1079_v22 = vpop.permute.xlu0 %1078  ;;  %v2785_v24 = vpack.c.bf16 %v1064_v0, %v1040_v45  ;;  %v1041_v2 = vsel %vm1036_vm15, %v2943_v31, %v3551_v54  ;;  %v2787_v9 = vpack.c.bf16 %v1063_v55, %v1039_v51  ;;  %vm1986_vm15 = vcmask 785408  }
 0x253   :  { %2784 = vmatpush1.bf16.msra.mxu1 %v2783_v47  ;;  %v1065_v38 = vsel %vm1060_vm0, %v2948_v49, %v1059_v16  ;;  %v2802_v7 = vpack.c.bf16 %v1059_v16, %v3551_v54  ;;  %v1086_v60 = vsel %vm608_vm7, %v3549_v3, %v1079_v22  ;;  %vm1988_vm0 = vcmask 916480  }
 0x254   :  { %v2804_v21 = vpack.c.bf16 %v1065_v38, %v1041_v2  ;;  %2786 = vmatprep.subr.bf16.mxu1 %v2785_v24 }
 0x255   :  { %2803 = vmatprep.subr.bf16.mxu0 %v2802_v7 }
 0x256   :  { %v1081_v28 = vpop.permute.xlu1 %1080  ;;  %v1083_v58 = vpop.permute.xlu0 %1082  ;;  %2805 = vmatpush1.bf16.msra.mxu0 %v2804_v21 }
 0x257   :  { %2788 = vmatpush1.bf16.msra.mxu1 %v2787_v9  ;;  %1263 = vmatprep.subr.mxu0 %v1083_v58  ;;  %v1087_v32 = vsel %vm608_vm7, %v1079_v22, %v1081_v28  ;;  %v1088_v35 = vsel %vm608_vm7, %v1081_v28, %v1083_v58  ;;  %vm2027_vm7 = vcmask 621568  }
 0x258   :  { %1192 = vmatprep.subr.mxu1 %v1087_v32 }
 0x25a   :  { %1264 = vmatpush1.msra.mxu0 %v1088_v35 }
 0x25b   :  { %1193 = vmatpush1.msra.mxu1 %v1086_v60  ;;  %2724 = vmatmul.mubr.msk.f32.vlgmr.msra.gmra.mrb[2].mxu0 %vm606_vm6, %v3562_v57 }
 0x25c   :  { %2722 = vmatmul.mubr.msk.f32.vlgmr.msra.gmra.mrb[0].mxu1 %vm606_vm6, %v3562_v57  ;;  %vm2008_vm6 = vcmask 605184  }
 0x267   :  { %v1100_v50 = vpop.permute.xlu1 %1099 }
 0x319   :  { %v1171_v54 = vpop.f32.mrb[0].mxu0 }
 0x31a   :  { %v1173_v40 = vpop.f32.mrb[1].mxu0  ;;  %v1172_v42 = vadd.f32 %v1171_v54, %v1100_v50 }
 0x31b   :  { %v1174_v18 = vadd.f32 %v1173_v40, %v1100_v50 }
 0x31c   :  { %v3617_v3 = vmax.f32 %v1172_v42, 0.0 }
 0x31d   :  { %v1318_v19 = vmax.f32 %v1174_v18, 0.0 }
 0x32e   :  { %v1313_v36 = vpop.f32.mrb[2].mxu0 }
 0x32f   :  { %v1242_v5 = vpop.f32.mrb[0].mxu1  ;;  %v1315_v13 = vpop.f32.mrb[3].mxu0  ;;  %v1314_v63 = vadd.f32 %v1313_v36, %v1100_v50 }
 0x330   :  { %v1243_v11 = vadd.f32 %v1242_v5, %v1100_v50  ;;  %v1244_v14 = vpop.f32.mrb[1].mxu1 }
 0x331   :  { %v1245_v57 = vadd.f32 %v1244_v14, %v1100_v50  ;;  %v1321_v53 = vmax.f32 %v1314_v63, 0.0 }
 0x332   :  { %v1319_v17 = vmax.f32 %v1243_v11, 0.0 }
 0x333   :  { %v1320_v43 = vmax.f32 %v1245_v57, 0.0 }
 0x334   :  { %2001 = vrot.lane.b32.xlu1 %v1319_v17, %s3026_s19  ;;  %2004 = vrot.lane.b32.xlu0 %v1319_v17, %s3032_s1 }
 0x338   :  { %1999 = vrot.lane.b32.xlu0 %v1319_v17, %s3029_s22  ;;  %1323 = vrot.lane.b32.xlu1 %v3617_v3, %s3029_s22 }
 0x33c   :  { %1326 = vrot.lane.b32.xlu0 %v3617_v3, %s3026_s19  ;;  %1329 = vrot.lane.b32.xlu1 %v3617_v3, %s3032_s1 }
 0x340   :  { %2023 = vrot.lane.b32.xlu0 %v1320_v43, %s3033_s26  ;;  %2006 = vrot.lane.b32.xlu1 %v1320_v43, %s3032_s1 }
 0x344   :  { %2018 = vrot.lane.b32.xlu0 %v1320_v43, %s3034_s27  ;;  %2020 = vrot.lane.b32.xlu1 %v1320_v43, %s3035_s0 }
 0x348   :  { %2012 = vrot.lane.b32.xlu0 %v1320_v43, %s3036_s28  ;;  %2010 = vrot.lane.b32.xlu1 %v1320_v43, %s3037_s29 }
 0x34c   :  { %2016 = vrot.lane.b32.xlu0 %v1320_v43, %s3038_s30  ;;  %2014 = vrot.lane.b32.xlu1 %v1320_v43, %s3039_s4 }
 0x350   :  { %2029 = vrot.lane.b32.xlu0 %v1321_v53, %s3040_s5  ;;  %2025 = vrot.lane.b32.xlu1 %v1321_v53, %s3033_s26 }
 0x354   :  { %2033 = vrot.lane.b32.xlu0 %v1321_v53, %s3041_s6  ;;  %2031 = vrot.lane.b32.xlu1 %v1321_v53, %s3042_s7 }
 0x358   :  { %2037 = vrot.lane.b32.xlu0 %v1321_v53, %s3043_s8  ;;  %2035 = vrot.lane.b32.xlu1 %v1321_v53, %s3044_s9 }
 0x35c   :  { %1349 = vrot.lane.b32.xlu0 %v1318_v19, %s3034_s27  ;;  %1352 = vrot.lane.b32.xlu1 %v1318_v19, %s3035_s0 }
 0x360   :  { %1355 = vrot.lane.b32.xlu0 %v1318_v19, %s3033_s26  ;;  %1358 = vrot.lane.b32.xlu1 %v1318_v19, %s3040_s5 }
 0x364   :  { %2039 = vrot.lane.b32.xlu0 %v1319_v17, %s3045_s10  ;;  %1344 = vrot.lane.b32.xlu1 %v1318_v19, %s3038_s30 }
 0x368   :  { %1342 = vrot.lane.b32.xlu0 %v3617_v3, %s3038_s30  ;;  %1370 = vrot.lane.b32.xlu1 %v1319_v17, %s3044_s9 }
 0x36c   :  { %1368 = vrot.lane.b32.xlu0 %v1318_v19, %s3044_s9  ;;  %1335 = vrot.lane.b32.xlu1 %v3617_v3, %s3036_s28 }
 0x370   :  { %1332 = vrot.lane.b32.xlu0 %v3617_v3, %s3037_s29  ;;  %1361 = vrot.lane.b32.xlu1 %v1318_v19, %s3042_s7 }
 0x374   :  { %1338 = vrot.lane.b32.xlu0 %v3617_v3, %s3039_s4  ;;  %1375 = vrot.lane.b32.xlu1 %v1319_v17, %s3043_s8 }
 0x378   :  { %1364 = vrot.lane.b32.xlu0 %v1318_v19, %s3041_s6 }
 0x3a6   :  { %v2002_v20 = vpop.permute.xlu1 %2001  ;;  %v2005_v23 = vpop.permute.xlu0 %2004 }
 0x3a7   :  { %2043 = vrot.lane.b32.xlu0 %v2002_v20, %s3045_s10 }
 0x3aa   :  { %v2000_v25 = vpop.permute.xlu0 %1999  ;;  %v1324_v26 = vpop.permute.xlu1 %1323 }
 0x3ab   :  { %2041 = vrot.lane.b32.xlu1 %v2000_v25, %s3045_s10 }
 0x3ae   :  { %v1327_v27 = vpop.permute.xlu0 %1326  ;;  %v1330_v4 = vpop.permute.xlu1 %1329 }
 0x3af   :  { %v1378_v6 = vcombine.low %v3617_v3, %v1327_v27  ;;  %v1379_v8 = vcombine.high %v3617_v3, %v1327_v27  ;;  %v1394_v29 = vcombine.low %v1324_v26, %v1330_v4  ;;  %v1395_v12 = vcombine.high %v1324_v26, %v1330_v4 }
 0x3b1   :  { %v1386_v62 = vrot.slane %v1378_v6, %v3134_v30  ;;  %v1393_v33 = vrot.slane %v1379_v8, %v3134_v30  ;;  %v1402_v34 = vrot.slane %v1394_v29, %v3134_v30  ;;  %v1409_v10 = vrot.slane %v1395_v12, %v3134_v30 }
 0x3b2   :  { %v2024_v15 = vpop.permute.xlu0 %2023  ;;  %v2007_v37 = vpop.permute.xlu1 %2006 }
 0x3b3   :  { %v1442_v61 = vcombine.low %v1386_v62, %v1402_v34  ;;  %v1443_v1 = vcombine.high %v1386_v62, %v1402_v34  ;;  %v1458_v41 = vcombine.low %v1393_v33, %v1409_v10  ;;  %v1459_v44 = vcombine.high %v1393_v33, %v1409_v10 }
 0x3b4   :  { %v2009_v54 = vsel %vm2008_vm6, %v2005_v23, %v2007_v37 }
 0x3b5   :  { %v1450_v46 = vrot.slane %v1442_v61, %v3163_v56  ;;  %v1457_v48 = vrot.slane %v1443_v1, %v3163_v56  ;;  %v1466_v49 = vrot.slane %v1458_v41, %v3163_v56  ;;  %v1473_v52 = vrot.slane %v1459_v44, %v3163_v56 }
 0x3b6   :  { %v2019_v31 = vpop.permute.xlu0 %2018  ;;  %v2021_v59 = vpop.permute.xlu1 %2020 }
 0x3b7   :  { %v2725_v39 = vcombine.low %v1450_v46, %v1457_v48  ;;  %v2727_v47 = vcombine.high %v1450_v46, %v1457_v48  ;;  %v2729_v45 = vcombine.low %v1466_v49, %v1473_v52  ;;  %v2731_v0 = vcombine.high %v1466_v49, %v1473_v52  ;;  %2055 = vrot.lane.b32.xlu0 %v2019_v31, %s3045_s10 }
 0x3b8   :  { %2057 = vrot.lane.b32.xlu1 %v2021_v59, %s3045_s10 }
 0x3b9   :  { %v1658_v51 = vrot.slane %v2725_v39, %v3134_v30  ;;  %v1674_v16 = vrot.slane %v2727_v47, %v3134_v30  ;;  %v1690_v22 = vrot.slane %v2729_v45, %v3134_v30  ;;  %v1706_v24 = vrot.slane %v2731_v0, %v3134_v30 }
 0x3ba   :  { %v2013_v55 = vpop.permute.xlu0 %2012  ;;  %v2011_v2 = vpop.permute.xlu1 %2010 }
 0x3bb   :  { %2047 = vrot.lane.b32.xlu0 %v2011_v2, %s3045_s10  ;;  %v1714_v38 = vcombine.low %v1658_v51, %v1674_v16  ;;  %v1746_v7 = vcombine.low %v1690_v22, %v1706_v24  ;;  %v1715_v11 = vcombine.high %v1658_v51, %v1674_v16  ;;  %v1747_v14 = vcombine.high %v1690_v22, %v1706_v24 }
 0x3bc   :  { %2049 = vrot.lane.b32.xlu1 %v2013_v55, %s3045_s10 }
 0x3bd   :  { %v3660_v9 = vrot.slane %v1714_v38, %v3163_v56  ;;  %v3663_v21 = vrot.slane %v1746_v7, %v3163_v56  ;;  %v1729_v3 = vrot.slane %v1715_v11, %v3163_v56  ;;  %v1761_v57 = vrot.slane %v1747_v14, %v3163_v56 }
 0x3be   :  { %v2017_v28 = vpop.permute.xlu0 %2016  ;;  %v2015_v58 = vpop.permute.xlu1 %2014 }
 0x3bf   :  { %2051 = vrot.lane.b32.xlu0 %v2015_v58, %s3045_s10  ;;  %v1778_v32 = vcombine.low %v3660_v9, %v3663_v21  ;;  %v1779_v43 = vcombine.high %v3660_v9, %v3663_v21  ;;  %v1780_v25 = vcombine.low %v1729_v3, %v1761_v57  ;;  %v1781_v10 = vcombine.high %v1729_v3, %v1761_v57 }
 0x3c0   :  { %2053 = vrot.lane.b32.xlu1 %v2017_v28, %s3045_s10 }
 0x3c2   :  { %v2030_v35 = vpop.permute.xlu0 %2029  ;;  %v2026_v60 = vpop.permute.xlu1 %2025 }
 0x3c3   :  { %v2028_v36 = vsel %vm2027_vm7, %v2024_v15, %v2026_v60 }
 0x3c4   :  { %2045 = vrot.lane.b32.xlu1 %v2009_v54, %s3045_s10 }
 0x3c6   :  { %v2034_v40 = vpop.permute.xlu0 %2033  ;;  %v2032_v50 = vpop.permute.xlu1 %2031 }
 0x3c7   :  { %2063 = vrot.lane.b32.xlu0 %v2032_v50, %s3045_s10 }
 0x3c8   :  { %2061 = vrot.lane.b32.xlu1 %v2030_v35, %s3045_s10 }
 0x3ca   :  { %v2038_v5 = vpop.permute.xlu0 %2037  ;;  %v2036_v13 = vpop.permute.xlu1 %2035 }
 0x3cb   :  { %2059 = vrot.lane.b32.xlu0 %v2028_v36, %s3045_s10 }
 0x3cc   :  { %2065 = vrot.lane.b32.xlu1 %v2034_v40, %s3045_s10 }
 0x3ce   :  { %v1350_v42 = vpop.permute.xlu0 %1349  ;;  %v1353_v17 = vpop.permute.xlu1 %1352 }
 0x3cf   :  { %2067 = vrot.lane.b32.xlu0 %v2036_v13, %s3045_s10 }
 0x3d0   :  { %2069 = vrot.lane.b32.xlu1 %v2038_v5, %s3045_s10 }
 0x3d2   :  { %v1356_v63 = vpop.permute.xlu0 %1355  ;;  %v1359_v53 = vpop.permute.xlu1 %1358 }
 0x3d3   :  { %v1514_v18 = vcombine.low %v1350_v42, %v1356_v63  ;;  %v1515_v19 = vcombine.high %v1350_v42, %v1356_v63  ;;  %v1530_v20 = vcombine.low %v1353_v17, %v1359_v53  ;;  %v1531_v23 = vcombine.high %v1353_v17, %v1359_v53  ;;  %1923 = vrot.lane.b32.xlu0 %v1779_v43, %s3019_s12 }
 0x3d5   :  { %v1522_v26 = vrot.slane %v1514_v18, %v3134_v30  ;;  %v1529_v27 = vrot.slane %v1515_v19, %v3134_v30  ;;  %v1538_v4 = vrot.slane %v1530_v20, %v3134_v30  ;;  %v1545_v6 = vrot.slane %v1531_v23, %v3134_v30 }
 0x3d6   :  { %v3685_v8 = vpop.permute.xlu0 %2039  ;;  %v1345_v29 = vpop.permute.xlu1 %1344 }
 0x3d7   :  { %v1578_v12 = vcombine.low %v1522_v26, %v1538_v4  ;;  %v1579_v62 = vcombine.high %v1522_v26, %v1538_v4  ;;  %v1594_v33 = vcombine.low %v1529_v27, %v1545_v6  ;;  %v1595_v34 = vcombine.high %v1529_v27, %v1545_v6  ;;  %1927 = vrot.lane.b32.xlu0 %v1780_v25, %s3023_s16 }
 0x3d9   :  { %v1586_v15 = vrot.slane %v1578_v12, %v3163_v56  ;;  %v1593_v37 = vrot.slane %v1579_v62, %v3163_v56  ;;  %v1602_v61 = vrot.slane %v1594_v33, %v3163_v56  ;;  %v1609_v1 = vrot.slane %v1595_v34, %v3163_v56 }
 0x3da   :  { %v1343_v41 = vpop.permute.xlu0 %1342  ;;  %v1371_v44 = vpop.permute.xlu1 %1370 }
 0x3db   :  { %v2733_v46 = vcombine.low %v1586_v15, %v1593_v37  ;;  %v2735_v48 = vcombine.high %v1586_v15, %v1593_v37  ;;  %v2737_v49 = vcombine.low %v1602_v61, %v1609_v1  ;;  %v2739_v52 = vcombine.high %v1602_v61, %v1609_v1  ;;  %1931 = vrot.lane.b32.xlu0 %v1781_v10, %s3046_s11 }
 0x3dc   :  { %v1347_v7 = vsel %vm1346_vm8, %v1343_v41, %v1345_v29 }
 0x3dd   :  { %v1794_v31 = vrot.slane %v2733_v46, %v3134_v30  ;;  %v1810_v59 = vrot.slane %v2735_v48, %v3134_v30  ;;  %v1826_v39 = vrot.slane %v2737_v49, %v3134_v30  ;;  %v1842_v47 = vrot.slane %v2739_v52, %v3134_v30 }
 0x3de   :  { %v1369_v45 = vpop.permute.xlu0 %1368  ;;  %v1336_v0 = vpop.permute.xlu1 %1335 }
 0x3df   :  { %v1850_v51 = vcombine.low %v1794_v31, %v1810_v59  ;;  %v1882_v16 = vcombine.low %v1826_v39, %v1842_v47  ;;  %v1851_v22 = vcombine.high %v1794_v31, %v1810_v59  ;;  %v1883_v24 = vcombine.high %v1826_v39, %v1842_v47 }
 0x3e0   :  { %v1426_v54 = vcombine.low %v1336_v0, %v1347_v7  ;;  %v1427_v40 = vcombine.high %v1336_v0, %v1347_v7  ;;  %v1373_v11 = vsel %vm1372_vm11, %v1369_v45, %v1371_v44 }
 0x3e1   :  { %v3698_v55 = vrot.slane %v1850_v51, %v3163_v56  ;;  %v3701_v38 = vrot.slane %v1882_v16, %v3163_v56  ;;  %v1865_v58 = vrot.slane %v1851_v22, %v3163_v56  ;;  %v1897_v35 = vrot.slane %v1883_v24, %v3163_v56 }
 0x3e2   :  { %v1333_v2 = vpop.permute.xlu0 %1332  ;;  %v1362_v50 = vpop.permute.xlu1 %1361  ;;  %v1434_v42 = vrot.slane %v1426_v54, %v3134_v30  ;;  %v1441_v17 = vrot.slane %v1427_v40, %v3134_v30 }
 0x3e3   :  { %v1915_v28 = vcombine.high %v3698_v55, %v3701_v38  ;;  %v1914_v60 = vcombine.low %v3698_v55, %v3701_v38  ;;  %v1916_v14 = vcombine.low %v1865_v58, %v1897_v35  ;;  %v1546_v43 = vcombine.low %v1362_v50, %v1373_v11 }
 0x3e4   :  { %v1547_v63 = vcombine.high %v1362_v50, %v1373_v11  ;;  %v1917_v4 = vcombine.high %v1865_v58, %v1897_v35 }
 0x3e5   :  { %1951 = vrot.lane.b32.xlu1 %v1915_v28, %s3019_s12  ;;  %v1554_v33 = vrot.slane %v1546_v43, %v3134_v30 }
 0x3e6   :  { %v1339_v36 = vpop.permute.xlu0 %1338  ;;  %v1376_v25 = vpop.permute.xlu1 %1375  ;;  %v1561_v34 = vrot.slane %v1547_v63, %v3134_v30 }
 0x3e7   :  { %v1410_v5 = vcombine.low %v1333_v2, %v1339_v36  ;;  %v1411_v13 = vcombine.high %v1333_v2, %v1339_v36 }
 0x3e9   :  { %v1418_v3 = vrot.slane %v1410_v5, %v3134_v30  ;;  %v1425_v57 = vrot.slane %v1411_v13, %v3134_v30  ;;  %1955 = vrot.lane.b32.xlu1 %v1916_v14, %s3023_s16 }
 0x3ea   :  { %v1365_v53 = vpop.permute.xlu0 %1364 }
 0x3eb   :  { %v1474_v18 = vcombine.low %v1418_v3, %v1434_v42  ;;  %v1475_v19 = vcombine.high %v1418_v3, %v1434_v42  ;;  %v1490_v20 = vcombine.low %v1425_v57, %v1441_v17  ;;  %v1491_v23 = vcombine.high %v1425_v57, %v1441_v17 }
 0x3ec   :  { %v1562_v26 = vcombine.low %v1365_v53, %v1376_v25  ;;  %v1563_v27 = vcombine.high %v1365_v53, %v1376_v25 }
 0x3ed   :  { %v1482_v6 = vrot.slane %v1474_v18, %v3163_v56  ;;  %v1489_v29 = vrot.slane %v1475_v19, %v3163_v56  ;;  %v1498_v12 = vrot.slane %v1490_v20, %v3163_v56  ;;  %v1505_v62 = vrot.slane %v1491_v23, %v3163_v56  ;;  %1959 = vrot.lane.b32.xlu1 %v1917_v4, %s3046_s11 }
 0x3ee   :  { %v1570_v10 = vrot.slane %v1562_v26, %v3134_v30  ;;  %v1577_v15 = vrot.slane %v1563_v27, %v3134_v30 }
 0x3ef   :  { %v2726_v37 = vcombine.low %v1482_v6, %v1489_v29  ;;  %v2728_v61 = vcombine.high %v1482_v6, %v1489_v29  ;;  %v2730_v1 = vcombine.low %v1498_v12, %v1505_v62  ;;  %v2732_v41 = vcombine.high %v1498_v12, %v1505_v62 }
 0x3f0   :  { %v1610_v44 = vcombine.low %v1554_v33, %v1570_v10  ;;  %v1611_v46 = vcombine.high %v1554_v33, %v1570_v10  ;;  %v1626_v48 = vcombine.low %v1561_v34, %v1577_v15  ;;  %v1627_v49 = vcombine.high %v1561_v34, %v1577_v15 }
 0x3f1   :  { %v1665_v52 = vrot.slane %v2726_v37, %v3134_v30  ;;  %v1681_v31 = vrot.slane %v2728_v61, %v3134_v30  ;;  %v1697_v59 = vrot.slane %v2730_v1, %v3134_v30  ;;  %v1713_v39 = vrot.slane %v2732_v41, %v3134_v30 }
 0x3f2   :  { %v1618_v47 = vrot.slane %v1610_v44, %v3163_v56  ;;  %v1625_v45 = vrot.slane %v1611_v46, %v3163_v56  ;;  %v1634_v0 = vrot.slane %v1626_v48, %v3163_v56  ;;  %v1641_v51 = vrot.slane %v1627_v49, %v3163_v56 }
 0x3f3   :  { %v1730_v16 = vcombine.low %v1665_v52, %v1681_v31  ;;  %v1762_v22 = vcombine.low %v1697_v59, %v1713_v39  ;;  %v1731_v13 = vcombine.high %v1665_v52, %v1681_v31  ;;  %v1763_v11 = vcombine.high %v1697_v59, %v1713_v39 }
 0x3f4   :  { %v2734_v24 = vcombine.low %v1618_v47, %v1625_v45  ;;  %v2736_v2 = vcombine.high %v1618_v47, %v1625_v45  ;;  %v2738_v7 = vcombine.low %v1634_v0, %v1641_v51  ;;  %v2740_v28 = vcombine.high %v1634_v0, %v1641_v51 }
 0x3f5   :  { %v1738_v58 = vrot.slane %v1730_v16, %v3163_v56  ;;  %v1770_v35 = vrot.slane %v1762_v22, %v3163_v56  ;;  %v1745_v43 = vrot.slane %v1731_v13, %v3163_v56  ;;  %v1777_v63 = vrot.slane %v1763_v11, %v3163_v56 }
 0x3f6   :  { %v1801_v54 = vrot.slane %v2734_v24, %v3134_v30  ;;  %v1817_v40 = vrot.slane %v2736_v2, %v3134_v30  ;;  %v1833_v50 = vrot.slane %v2738_v7, %v3134_v30  ;;  %v1849_v36 = vrot.slane %v2740_v28, %v3134_v30 }
 0x3f7   :  { %v1782_v5 = vcombine.low %v1738_v58, %v1770_v35  ;;  %v1783_v57 = vcombine.high %v1738_v58, %v1770_v35  ;;  %v1784_v20 = vcombine.low %v1745_v43, %v1777_v63  ;;  %v1785_v27 = vcombine.high %v1745_v43, %v1777_v63 }
 0x3f8   :  { %v1866_v14 = vcombine.low %v1801_v54, %v1817_v40  ;;  %v1898_v42 = vcombine.low %v1833_v50, %v1849_v36  ;;  %v1867_v18 = vcombine.high %v1801_v54, %v1817_v40  ;;  %v1899_v19 = vcombine.high %v1833_v50, %v1849_v36 }
 0x3f9   :  { %1935 = vrot.lane.b32.xlu0 %v1782_v5, %s3047_s13 }
 0x3fa   :  { %v1874_v17 = vrot.slane %v1866_v14, %v3163_v56  ;;  %v1906_v3 = vrot.slane %v1898_v42, %v3163_v56  ;;  %v1881_v25 = vrot.slane %v1867_v18, %v3163_v56  ;;  %v1913_v26 = vrot.slane %v1899_v19, %v3163_v56 }
 0x3fc   :  { %v1918_v53 = vcombine.low %v1874_v17, %v1906_v3  ;;  %v1919_v23 = vcombine.high %v1874_v17, %v1906_v3  ;;  %v1920_v4 = vcombine.low %v1881_v25, %v1913_v26  ;;  %v1921_v6 = vcombine.high %v1881_v25, %v1913_v26 }
 0x3fd   :  { %1939 = vrot.lane.b32.xlu0 %v1783_v57, %s3048_s14 }
 0x3fe   :  { %1963 = vrot.lane.b32.xlu1 %v1918_v53, %s3047_s13 }
 0x401   :  { %1943 = vrot.lane.b32.xlu0 %v1784_v20, %s3049_s15 }
 0x402   :  { %1967 = vrot.lane.b32.xlu1 %v1919_v23, %s3048_s14 }
 0x405   :  { %1947 = vrot.lane.b32.xlu0 %v1785_v27, %s3034_s27 }
 0x406   :  { %1971 = vrot.lane.b32.xlu1 %v1920_v4, %s3049_s15 }
 0x40a   :  { %1975 = vrot.lane.b32.xlu1 %v1921_v6, %s3034_s27 }
 0x419   :  { %v2044_v29 = vpop.permute.xlu0 %2043 }
 0x41a   :  { %v2087_v49 = vcombine.low %v3685_v8, %v2044_v29  ;;  %v2088_v52 = vcombine.high %v3685_v8, %v2044_v29 }
 0x41c   :  { %v2095_v24 = vrot.slane %v2087_v49, %v3134_v30  ;;  %v2102_v2 = vrot.slane %v2088_v52, %v3134_v30 }
 0x41d   :  { %v2042_v12 = vpop.permute.xlu1 %2041 }
 0x429   :  { %v2056_v62 = vpop.permute.xlu0 %2055 }
 0x42a   :  { %v2058_v33 = vpop.permute.xlu1 %2057 }
 0x42d   :  { %v2048_v34 = vpop.permute.xlu0 %2047 }
 0x42e   :  { %v2050_v10 = vpop.permute.xlu1 %2049 }
 0x431   :  { %v2052_v15 = vpop.permute.xlu0 %2051 }
 0x432   :  { %v2119_v37 = vcombine.low %v2048_v34, %v2052_v15  ;;  %v2120_v61 = vcombine.high %v2048_v34, %v2052_v15  ;;  %v2054_v1 = vpop.permute.xlu1 %2053 }
 0x433   :  { %v2135_v41 = vcombine.low %v2050_v10, %v2054_v1  ;;  %v2136_v44 = vcombine.high %v2050_v10, %v2054_v1 }
 0x434   :  { %v2127_v46 = vrot.slane %v2119_v37, %v3134_v30  ;;  %v2134_v48 = vrot.slane %v2120_v61, %v3134_v30 }
 0x435   :  { %v2143_v31 = vrot.slane %v2135_v41, %v3134_v30  ;;  %v2150_v59 = vrot.slane %v2136_v44, %v3134_v30 }
 0x436   :  { %v2046_v39 = vpop.permute.xlu1 %2045 }
 0x437   :  { %v2183_v47 = vcombine.low %v2127_v46, %v2143_v31  ;;  %v2184_v45 = vcombine.high %v2127_v46, %v2143_v31  ;;  %v2199_v0 = vcombine.low %v2134_v48, %v2150_v59  ;;  %v2200_v51 = vcombine.high %v2134_v48, %v2150_v59 }
 0x438   :  { %v2103_v16 = vcombine.low %v2042_v12, %v2046_v39  ;;  %v2104_v22 = vcombine.high %v2042_v12, %v2046_v39 }
 0x439   :  { %v2191_v7 = vrot.slane %v2183_v47, %v3163_v56  ;;  %v2198_v28 = vrot.slane %v2184_v45, %v3163_v56  ;;  %v2064_v8 = vpop.permute.xlu0 %2063  ;;  %v2207_v58 = vrot.slane %v2199_v0, %v3163_v56  ;;  %v2214_v35 = vrot.slane %v2200_v51, %v3163_v56 }
 0x43a   :  { %v2111_v54 = vrot.slane %v2103_v16, %v3134_v30  ;;  %v2118_v40 = vrot.slane %v2104_v22, %v3134_v30  ;;  %v2062_v50 = vpop.permute.xlu1 %2061 }
 0x43b   :  { %v2742_v36 = vcombine.low %v2191_v7, %v2198_v28  ;;  %v2744_v17 = vcombine.high %v2191_v7, %v2198_v28  ;;  %v2746_v3 = vcombine.low %v2207_v58, %v2214_v35  ;;  %v2239_v53 = vcombine.low %v2058_v33, %v2062_v50 }
 0x43c   :  { %v2151_v5 = vcombine.low %v2095_v24, %v2111_v54  ;;  %v2152_v13 = vcombine.high %v2095_v24, %v2111_v54  ;;  %v2167_v11 = vcombine.low %v2102_v2, %v2118_v40  ;;  %v2168_v14 = vcombine.high %v2102_v2, %v2118_v40 }
 0x43d   :  { %v2060_v42 = vpop.permute.xlu0 %2059  ;;  %v2240_v18 = vcombine.high %v2058_v33, %v2062_v50  ;;  %v3769_v23 = vrot.slane %v2742_v36, %v3134_v30  ;;  %v2748_v25 = vcombine.high %v2207_v58, %v2214_v35  ;;  %v2247_v4 = vrot.slane %v2239_v53, %v3134_v30 }
 0x43e   :  { %v2159_v57 = vrot.slane %v2151_v5, %v3163_v56  ;;  %v2166_v43 = vrot.slane %v2152_v13, %v3163_v56  ;;  %v2066_v63 = vpop.permute.xlu1 %2065  ;;  %v2223_v19 = vcombine.low %v2056_v62, %v2060_v42  ;;  %v2224_v20 = vcombine.high %v2056_v62, %v2060_v42 }
 0x43f   :  { %v2175_v26 = vrot.slane %v2167_v11, %v3163_v56  ;;  %v2182_v27 = vrot.slane %v2168_v14, %v3163_v56  ;;  %v2254_v6 = vrot.slane %v2240_v18, %v3134_v30  ;;  %v3778_v33 = vrot.slane %v2744_v17, %v3134_v30 }
 0x440   :  { %v2231_v29 = vrot.slane %v2223_v19, %v3134_v30  ;;  %v2238_v12 = vrot.slane %v2224_v20, %v3134_v30  ;;  %v3781_v62 = vrot.slane %v2746_v3, %v3134_v30  ;;  %v2741_v10 = vcombine.low %v2159_v57, %v2166_v43 }
 0x441   :  { %v2068_v34 = vpop.permute.xlu0 %2067  ;;  %v2743_v15 = vcombine.high %v2159_v57, %v2166_v43  ;;  %v2745_v31 = vcombine.low %v2175_v26, %v2182_v27  ;;  %v2747_v59 = vcombine.high %v2175_v26, %v2182_v27  ;;  %v2422_v22 = vrot.slane %v2748_v25, %v3134_v30 }
 0x442   :  { %v2070_v37 = vpop.permute.xlu1 %2069  ;;  %v2287_v61 = vcombine.low %v2231_v29, %v2247_v4  ;;  %v2288_v1 = vcombine.high %v2231_v29, %v2247_v4  ;;  %v2303_v41 = vcombine.low %v2238_v12, %v2254_v6  ;;  %v2304_v44 = vcombine.high %v2238_v12, %v2254_v6 }
 0x443   :  { %v2255_v46 = vcombine.low %v2064_v8, %v2068_v34  ;;  %v2256_v48 = vcombine.high %v2064_v8, %v2068_v34  ;;  %v2271_v49 = vcombine.low %v2066_v63, %v2070_v37  ;;  %v2272_v52 = vcombine.high %v2066_v63, %v2070_v37 }
 0x444   :  { %v2295_v39 = vrot.slane %v2287_v61, %v3163_v56  ;;  %v2302_v47 = vrot.slane %v2288_v1, %v3163_v56  ;;  %v3791_v24 = vrot.slane %v2741_v10, %v3134_v30  ;;  %v2311_v2 = vrot.slane %v2303_v41, %v3163_v56 }
 0x445   :  { %v2263_v45 = vrot.slane %v2255_v46, %v3134_v30  ;;  %v2270_v0 = vrot.slane %v2256_v48, %v3134_v30  ;;  %v2279_v51 = vrot.slane %v2271_v49, %v3134_v30  ;;  %v2286_v16 = vrot.slane %v2272_v52, %v3134_v30 }
 0x446   :  { %v2318_v7 = vrot.slane %v2304_v44, %v3163_v56  ;;  %v3796_v54 = vrot.slane %v2743_v15, %v3134_v30  ;;  %v3799_v40 = vrot.slane %v2745_v31, %v3134_v30  ;;  %v2415_v50 = vrot.slane %v2747_v59, %v3134_v30 }
 0x447   :  { %v2319_v28 = vcombine.low %v2263_v45, %v2279_v51  ;;  %v2320_v8 = vcombine.high %v2263_v45, %v2279_v51  ;;  %v2335_v58 = vcombine.low %v2270_v0, %v2286_v16  ;;  %v2336_v35 = vcombine.high %v2270_v0, %v2286_v16 }
 0x448   :  { %v2749_v36 = vcombine.low %v2295_v39, %v2302_v47  ;;  %v2751_v42 = vcombine.high %v2295_v39, %v2302_v47  ;;  %v2753_v17 = vcombine.low %v2311_v2, %v2318_v7  ;;  %v2439_v3 = vcombine.low %v3769_v23, %v3778_v33 }
 0x449   :  { %v2327_v5 = vrot.slane %v2319_v28, %v3163_v56  ;;  %v2334_v13 = vrot.slane %v2320_v8, %v3163_v56  ;;  %v2343_v11 = vrot.slane %v2335_v58, %v3163_v56  ;;  %v2350_v14 = vrot.slane %v2336_v35, %v3163_v56  ;;  %v1924_v35 = vpop.permute.xlu0 %1923 }
 0x44a   :  { %v2471_v57 = vcombine.low %v3781_v62, %v2422_v22  ;;  %v2755_v19 = vcombine.high %v2311_v2, %v2318_v7  ;;  %v2447_v20 = vrot.slane %v2439_v3, %v3163_v56  ;;  %v2440_v26 = vcombine.high %v3769_v23, %v3778_v33 }
 0x44b   :  { %v2750_v43 = vcombine.low %v2327_v5, %v2334_v13  ;;  %v2752_v63 = vcombine.high %v2327_v5, %v2334_v13  ;;  %v2754_v53 = vcombine.low %v2343_v11, %v2350_v14  ;;  %v2756_v18 = vcombine.high %v2343_v11, %v2350_v14 }
 0x44c   :  { %v2479_v25 = vrot.slane %v2471_v57, %v3163_v56  ;;  %v2472_v34 = vcombine.high %v3781_v62, %v2422_v22  ;;  %v2503_v10 = vrot.slane %v2749_v36, %v3134_v30  ;;  %v2423_v15 = vcombine.low %v3791_v24, %v3796_v54 }
 0x44d   :  { %v2510_v27 = vrot.slane %v2750_v43, %v3134_v30  ;;  %v2526_v4 = vrot.slane %v2752_v63, %v3134_v30  ;;  %v2542_v6 = vrot.slane %v2754_v53, %v3134_v30  ;;  %v2558_v29 = vrot.slane %v2756_v18, %v3134_v30 }
 0x44e   :  { %v2491_v12 = vcombine.low %v2447_v20, %v2479_v25  ;;  %v2455_v37 = vcombine.low %v3799_v40, %v2415_v50  ;;  %v2519_v23 = vrot.slane %v2751_v42, %v3134_v30  ;;  %v2535_v33 = vrot.slane %v2753_v17, %v3134_v30  ;;  %v1928_v42 = vpop.permute.xlu0 %1927 }
 0x44f   :  { %v2575_v61 = vcombine.low %v2510_v27, %v2526_v4  ;;  %v2607_v1 = vcombine.low %v2542_v6, %v2558_v29  ;;  %v2551_v41 = vrot.slane %v2755_v19, %v3134_v30  ;;  %v2454_v44 = vrot.slane %v2440_v26, %v3163_v56 }
 0x450   :  { %2644 = vrot.lane.b32.xlu0 %v2491_v12, %s3047_s13  ;;  %v3828_v62 = vrot.slane %v2423_v15, %v3163_v56  ;;  %v3831_v46 = vrot.slane %v2455_v37, %v3163_v56  ;;  %v2492_v48 = vcombine.high %v2447_v20, %v2479_v25  ;;  %v2486_v49 = vrot.slane %v2472_v34, %v3163_v56 }
 0x451   :  { %v2583_v52 = vrot.slane %v2575_v61, %v3163_v56  ;;  %v2615_v31 = vrot.slane %v2607_v1, %v3163_v56  ;;  %v2576_v39 = vcombine.high %v2510_v27, %v2526_v4  ;;  %v2608_v30 = vcombine.high %v2542_v6, %v2558_v29 }
 0x452   :  { %v2559_v47 = vcombine.low %v2503_v10, %v2519_v23  ;;  %v2591_v45 = vcombine.low %v2535_v33, %v2551_v41  ;;  %v2487_v0 = vcombine.low %v3828_v62, %v3831_v46  ;;  %v2493_v51 = vcombine.low %v2454_v44, %v2486_v49  ;;  %v1932_v18 = vpop.permute.xlu0 %1931 }
 0x453   :  { %v2627_v59 = vcombine.low %v2583_v52, %v2615_v31  ;;  %v2424_v16 = vcombine.high %v3791_v24, %v3796_v54  ;;  %v2456_v22 = vcombine.high %v3799_v40, %v2415_v50  ;;  %v2628_v28 = vcombine.high %v2583_v52, %v2615_v31 }
 0x454   :  { %2648 = vrot.lane.b32.xlu0 %v2492_v48, %s3048_s14  ;;  %v3844_v2 = vrot.slane %v2559_v47, %v3163_v56  ;;  %v3847_v7 = vrot.slane %v2591_v45, %v3163_v56  ;;  %v2590_v8 = vrot.slane %v2576_v39, %v3163_v56  ;;  %v2622_v58 = vrot.slane %v2608_v30, %v3163_v56 }
 0x455   :  { %2672 = vrot.lane.b32.xlu1 %v2627_v59, %s3047_s13  ;;  %v2488_v54 = vcombine.high %v3828_v62, %v3831_v46  ;;  %v2438_v40 = vrot.slane %v2424_v16, %v3163_v56  ;;  %v2470_v50 = vrot.slane %v2456_v22, %v3163_v56  ;;  %v2560_v5 = vcombine.high %v2503_v10, %v2519_v23 }
 0x456   :  { %v2623_v24 = vcombine.low %v3844_v2, %v3847_v7  ;;  %v2629_v36 = vcombine.low %v2590_v8, %v2622_v58  ;;  %v2592_v13 = vcombine.high %v2535_v33, %v2551_v41  ;;  %v2624_v17 = vcombine.high %v3844_v2, %v3847_v7 }
 0x457   :  { %v2489_v11 = vcombine.low %v2438_v40, %v2470_v50  ;;  %v1952_v14 = vpop.permute.xlu1 %1951  ;;  %v2574_v3 = vrot.slane %v2560_v5, %v3163_v56  ;;  %v2490_v43 = vcombine.high %v2438_v40, %v2470_v50  ;;  %v2494_v19 = vcombine.high %v2454_v44, %v2486_v49 }
 0x458   :  { %2652 = vrot.lane.b32.xlu0 %v2493_v51, %s3049_s15  ;;  %v2606_v57 = vrot.slane %v2592_v13, %v3163_v56  ;;  %v2630_v27 = vcombine.high %v2590_v8, %v2622_v58  ;;  %v1978_v6 = vsel %vm614_vm10, %v1778_v32, %v1924_v35  ;;  %v1990_v9 = vsel %vm614_vm10, %v1914_v60, %v1952_v14 }
 0x459   :  { %2676 = vrot.lane.b32.xlu1 %v2628_v28, %s3048_s14  ;;  %v1979_v29 = vsel %vm630_vm2, %v1978_v6, %v1928_v42 }
 0x45a   :  { %v2625_v63 = vcombine.low %v2574_v3, %v2606_v57  ;;  %v2626_v20 = vcombine.high %v2574_v3, %v2606_v57  ;;  %v1981_v34 = vsel %vm1980_vm12, %v1979_v29, %v1932_v18 }
 0x45b   :  { %v1956_v53 = vpop.permute.xlu1 %1955 }
 0x45c   :  { %2632 = vrot.lane.b32.xlu0 %v2488_v54, %s3019_s12  ;;  %v1991_v23 = vsel %vm630_vm2, %v1990_v9, %v1956_v53 }
 0x45d   :  { %2680 = vrot.lane.b32.xlu1 %v2629_v36, %s3049_s15 }
 0x45f   :  { %v1960_v26 = vpop.permute.xlu1 %1959 }
 0x460   :  { %2636 = vrot.lane.b32.xlu0 %v2489_v11, %s3023_s16  ;;  %v1992_v1 = vsel %vm1980_vm12, %v1991_v23, %v1960_v26 }
 0x461   :  { %2660 = vrot.lane.b32.xlu1 %v2624_v17, %s3019_s12 }
 0x464   :  { %2640 = vrot.lane.b32.xlu0 %v2490_v43, %s3046_s11 }
 0x465   :  { %2664 = vrot.lane.b32.xlu1 %v2625_v63, %s3023_s16  ;;  %s3050_s16 = smov [#allocation5]  }
 0x466   :  { %s2709_s17 = sshll.u32 %s3050_s16, 4  ;;  %s2710_s17 = int_to_ptr.vmem [resolvable:$true] %s2709_s17 }
 0x467   :  { %s2973_s18 = scalar_lea.vmem %s2710_s17, 512  ;;  %p2978_p9 = scmp.lt.s32.totalorder %s2710_s17, %s2710_s17 }
 0x468   :  { %2656 = vrot.lane.b32.xlu0 %v2494_v19, %s3034_s27  ;;  %p2974_p8 = scmp.ne.s32.totalorder %s2710_s17, %s2973_s18  ;;  %p2979_p10 = scmp.lt.s32.totalorder %s2973_s18, %s2973_s18 }
 0x469   :  { %2668 = vrot.lane.b32.xlu1 %v2626_v20, %s3046_s11 }
 0x46a   :  { %p2980_p11 = por %p2979_p10, %p2978_p9 }
 0x46b   :  { %v1936_v25 = vpop.permute.xlu0 %1935 }
 0x46c   :  { %v1983_v15 = vsel %vm1982_vm13, %v1981_v34, %v1936_v25  ;;  %p2981_p12 = pnand %p2980_p11, %p2974_p8 }
 0x46d   :  { %2684 = vrot.lane.b32.xlu1 %v2630_v27, %s3034_s27 }
 0x46f   :  { %v1940_v56 = vpop.permute.xlu0 %1939 }
 0x470   :  { %v1964_v4 = vpop.permute.xlu1 %1963  ;;  %v1985_v37 = vsel %vm1984_vm14, %v1983_v15, %v1940_v56 }
 0x471   :  { %v1993_v41 = vsel %vm1982_vm13, %v1992_v1, %v1964_v4 }
 0x473   :  { %v1944_v12 = vpop.permute.xlu0 %1943 }
 0x474   :  { %v1968_v10 = vpop.permute.xlu1 %1967  ;;  %v1987_v21 = vsel %vm1986_vm15, %v1985_v37, %v1944_v12 }
 0x475   :  { %v1994_v44 = vsel %vm1984_vm14, %v1993_v41, %v1968_v10 }
 0x477   :  { %v1948_v32 = vpop.permute.xlu0 %1947 }
 0x478   :  { %v1989_v33 = vsel %vm1988_vm0, %v1987_v21, %v1948_v32  ;;  %v1972_v61 = vpop.permute.xlu1 %1971 }
 0x479   :  { %1997 = vst [vmem:[#allocation5] sm:$0xff] %v1989_v33  ;;  %v1995_v48 = vsel %vm1986_vm15, %v1994_v44, %v1972_v61 }
 0x47c   :  { %v1976_v55 = vpop.permute.xlu1 %1975 }
 0x47d   :  { %v1996_v38 = vsel %vm1988_vm0, %v1995_v48, %v1976_v55 }
 0x47e   :  { %1998 = vst [vmem:[#allocation5 + $0x8] sm:$0xff] %v1996_v38 }
 0x4c2   :  { %v2645_v60 = vpop.permute.xlu0 %2644 }
 0x4c6   :  { %v2649_v49 = vpop.permute.xlu0 %2648 }
 0x4c7   :  { %v2673_v52 = vpop.permute.xlu1 %2672 }
 0x4ca   :  { %v2653_v31 = vpop.permute.xlu0 %2652 }
 0x4cb   :  { %v2677_v59 = vpop.permute.xlu1 %2676 }
 0x4ce   :  { %v2633_v39 = vpop.permute.xlu0 %2632 }
 0x4cf   :  { %v2681_v30 = vpop.permute.xlu1 %2680  ;;  %v2687_v51 = vsel %vm614_vm10, %v2487_v0, %v2633_v39 }
 0x4d2   :  { %v2637_v47 = vpop.permute.xlu0 %2636 }
 0x4d3   :  { %v2661_v45 = vpop.permute.xlu1 %2660  ;;  %v2688_v16 = vsel %vm630_vm2, %v2687_v51, %v2637_v47 }
 0x4d4   :  { %v2694_v62 = vsel %vm614_vm10, %v2623_v24, %v2661_v45 }
 0x4d6   :  { %v2641_v22 = vpop.permute.xlu0 %2640 }
 0x4d7   :  { %v2689_v28 = vsel %vm1980_vm12, %v2688_v16, %v2641_v22  ;;  %v2665_v58 = vpop.permute.xlu1 %2664 }
 0x4d8   :  { %v2690_v8 = vsel %vm1982_vm13, %v2689_v28, %v2645_v60  ;;  %v2695_v46 = vsel %vm630_vm2, %v2694_v62, %v2665_v58 }
 0x4d9   :  { %v2691_v35 = vsel %vm1984_vm14, %v2690_v8, %v2649_v49 }
 0x4da   :  { %v2657_v54 = vpop.permute.xlu0 %2656  ;;  %v2692_v40 = vsel %vm1986_vm15, %v2691_v35, %v2653_v31 }
 0x4db   :  { %v2693_v50 = vsel %vm1988_vm0, %v2692_v40, %v2657_v54  ;;  %v2669_v0 = vpop.permute.xlu1 %2668 }
 0x4dc   :  { %2702 = vst [vmem:[#allocation5 + $0x10] sm:$0xff] %v2693_v50  ;;  %v2696_v36 = vsel %vm1980_vm12, %v2695_v46, %v2669_v0 }
 0x4dd   :  { %v2697_v5 = vsel %vm1982_vm13, %v2696_v36, %v2673_v52 }
 0x4de   :  { %v2698_v13 = vsel %vm1984_vm14, %v2697_v5, %v2677_v59 }
 0x4df   :  { %v2699_v11 = vsel %vm1986_vm15, %v2698_v13, %v2681_v30  ;;  %v2685_v14 = vpop.permute.xlu1 %2684 }
 0x4e0   :  { %v2700_v2 = vsel %vm1988_vm0, %v2699_v11, %v2685_v14 }
 0x4e1   :  { %2703 = vst [vmem:[#allocation5 + $0x18] sm:$0xff] %v2700_v2 }
 0x4e2   :  { %2984 = shalt.err (!%p2981_p12)
}
 0x4e3   :  { %s2985_s21 = scalar_lea.hbm %s3928_s3, 512 }
 0x4e4   :  { %p2986_p13 = scmp.ne.s32.totalorder %s3928_s3, %s2985_s21  ;;  %p2989_p0 = scmp.lt.u32.totalorder %s2985_s21, %s3928_s3 }
 0x4e6   :  { %p2991_p1 = pnand %p2989_p0, %p2986_p13 }
 0x4e8   :  { %2994 = shalt.err (!%p2991_p1)
}
 0x4e9   :  { %s3051_s25 = smov 256  }
 0x4ea   :  { %2715 = dma.vmem_to_hbm [thread:$0]  %s2710_s17, 512, %s3928_s3, [#allocation4], %s3051_s25, %s3051_s25, %s3019_s12  }
 0x4eb   :  { %2997 = dma.done.wait [#allocation4], 512  }
 0x4ec   :  { %2998 = vsyncadd [#allocation4], 4294966784 }
 0x4ed   :  { %2719 = vsyncpa [#allocation3], 1 }
 0x4ee   :  { %2720 = vsyncpa [#allocation4], 1 }

</bundles_post_ra>
